<compile_context>
chip_gen: v7x
topology: tpu7x:2x2x1
jax: 0.10.0
libtpu: 0.0.40
codegen_flags: <defaults>
</compile_context>

<pallas_src>
import functools

import jax
import jax.numpy as jnp
from jax.experimental import pallas as pl
from jax.experimental.pallas import tpu as pltpu


def _round_up(n, m):
    return (n + m - 1) // m * m


def saint_kernel(a_ref, x_ref,
                 w1_rel_ref, w1_root_ref, b1_ref,
                 w2_rel_ref, w2_root_ref, b2_ref,
                 wl_a_ref, wl_b_ref, bl_ref,
                 o_ref, *, num_classes):
    a = a_ref[...]                                   # [NB, NB] bf16 (block-diagonal)
    x = x_ref[...]                                   # [NB, FP] bf16

    # ---- GraphConv layer 1: two dots, f32 accumulation, VPU add ----
    agg1 = jnp.dot(a, x, preferred_element_type=jnp.float32)             # [NB, FP]
    h1 = (jnp.dot(agg1.astype(jnp.bfloat16), w1_rel_ref[...],
                  preferred_element_type=jnp.float32)
          + jnp.dot(x, w1_root_ref[...], preferred_element_type=jnp.float32)
          + b1_ref[...])
    h1 = jnp.maximum(h1, 0.0)                                            # relu (f32)
    h1_b = h1.astype(jnp.bfloat16)
    # dropout (eval) -> identity

    # ---- GraphConv layer 2 ----
    agg2 = jnp.dot(a, h1_b, preferred_element_type=jnp.float32)          # [NB, HP]
    h2 = (jnp.dot(agg2.astype(jnp.bfloat16), w2_rel_ref[...],
                  preferred_element_type=jnp.float32)
          + jnp.dot(h1_b, w2_root_ref[...], preferred_element_type=jnp.float32)
          + b2_ref[...])
    h2 = jnp.maximum(h2, 0.0)
    h2_b = h2.astype(jnp.bfloat16)
    # dropout (eval) -> identity

    # ---- final Linear over concat([h1, h2]) == two dots over the halves ----
    logits = (jnp.dot(h1_b, wl_a_ref[...], preferred_element_type=jnp.float32)
              + jnp.dot(h2_b, wl_b_ref[...], preferred_element_type=jnp.float32)
              + bl_ref[...])

    # ---- log_softmax over last dim; padded class columns masked out ----
    col = jax.lax.broadcasted_iota(jnp.int32, logits.shape, 1)
    logits = jnp.where(col < num_classes, logits, -1e30)
    m = jnp.max(logits, axis=-1, keepdims=True)
    z = logits - m
    lse = jnp.log(jnp.sum(jnp.exp(z), axis=-1, keepdims=True))
    o_ref[...] = z - lse


def saint_forward(x, src, dst, params, edge_weight=None):
    """x: [B, N, F] node features per sampled subgraph.
       src/dst: [B, E] edge endpoints (edge j->i given as src=j, dst=i; aggr='add').
       params: dict of f32 weight matrices stored as [in, out]."""
    B, N, F = x.shape
    H = params["w1_rel"].shape[1]
    C = params["bl"].shape[-1]

    FP = _round_up(F, 128)
    HP = _round_up(H, 128)
    CP = _round_up(C, 128)

    # ---- subgraph packing geometry ----
    Npad = _round_up(N, 16)                  # bf16 sublane-dense per-subgraph slot
    G = max(1, 128 // Npad)                  # subgraphs packed per grid step
    NB = _round_up(G * Npad, 128)            # packed rows per grid step (lane dense)
    num_blocks = -(-B // G)                  # ceil-div; demo picks B so this is >= 2

    b_idx = jnp.arange(B)
    blk = b_idx // G                         # which packed block each subgraph is in
    off = (b_idx % G) * Npad                 # row offset of the subgraph inside it
    rows = off[:, None] + jnp.arange(N)[None, :]        # [B, N] packed node rows

    # ---- block-diagonal adjacency, built directly at packed size (no pad pass) ----
    if edge_weight is None:
        edge_weight = jnp.ones(src.shape, dtype=jnp.float32)
    adj_p = jnp.zeros((num_blocks, NB, NB), dtype=jnp.float32)
    adj_p = adj_p.at[blk[:, None], off[:, None] + dst, off[:, None] + src].add(edge_weight)
    adj_p = adj_p.astype(jnp.bfloat16)       # exact for small-integer edge weights

    # ---- packed node features, built directly at packed size ----
    x_feat = jnp.pad(x, ((0, 0), (0, 0), (0, FP - F)))   # feature-lane pad only (small)
    x_p = jnp.zeros((num_blocks, NB, FP), dtype=jnp.float32)
    x_p = x_p.at[blk[:, None], rows].set(x_feat).astype(jnp.bfloat16)

    # ---- weights: rel/root kept separate (two-dot formulation), lane padded ----
    def pad2(w, r, c):
        return jnp.pad(w, ((0, r - w.shape[0]), (0, c - w.shape[1])))

    w1_rel = pad2(params["w1_rel"], FP, HP).astype(jnp.bfloat16)
    w1_root = pad2(params["w1_root"], FP, HP).astype(jnp.bfloat16)
    w2_rel = pad2(params["w2_rel"], HP, HP).astype(jnp.bfloat16)
    w2_root = pad2(params["w2_root"], HP, HP).astype(jnp.bfloat16)
    wl_a = pad2(params["wl_a"], HP, CP).astype(jnp.bfloat16)
    wl_b = pad2(params["wl_b"], HP, CP).astype(jnp.bfloat16)
    b1 = pad2(params["b1"], 1, HP)           # biases stay f32 (added post-accumulation)
    b2 = pad2(params["b2"], 1, HP)
    bl = pad2(params["bl"], 1, CP)

    # ---- VMEM budget & cost estimate derived from the actual block footprint ----
    bf16, f32 = 2, 4
    in_block_bytes = NB * NB * bf16 + NB * FP * bf16
    out_block_bytes = NB * CP * f32
    weight_bytes = (2 * FP * HP + 2 * HP * HP + 2 * HP * CP) * bf16 + (2 * HP + CP) * f32
    temp_bytes = NB * (FP + 3 * HP + CP) * f32               # rough in-body temporaries
    vmem_limit = 2 * (in_block_bytes + out_block_bytes) + weight_bytes + temp_bytes
    vmem_limit = int(min(max(vmem_limit + (4 << 20), 16 << 20), 48 << 20))

    flops_per_block = (2 * NB * NB * (FP + HP)               # A@x, A@h1
                       + 4 * NB * (FP * HP + HP * HP + HP * CP))  # rel+root+lin dots
    cost = pl.CostEstimate(
        flops=num_blocks * flops_per_block,
        transcendentals=num_blocks * NB * (CP + 1),
        bytes_accessed=num_blocks * (in_block_bytes + out_block_bytes) + weight_bytes,
    )

    kernel = functools.partial(saint_kernel, num_classes=C)

    def batched(shp):
        return pl.BlockSpec((pl.Squeezed(),) + shp, lambda b: (b,) + (0,) * len(shp))

    def shared(shp):
        return pl.BlockSpec(shp, lambda b: (0,) * len(shp))

    out = pl.pallas_call(
        kernel,
        out_shape=jax.ShapeDtypeStruct((num_blocks, NB, CP), jnp.float32),
        grid=(num_blocks,),
        in_specs=[
            batched((NB, NB)),        # block-diagonal adjacency (per packed block)
            batched((NB, FP)),        # packed node features
            shared((FP, HP)),         # w1_rel
            shared((FP, HP)),         # w1_root
            shared((1, HP)),          # b1
            shared((HP, HP)),         # w2_rel
            shared((HP, HP)),         # w2_root
            shared((1, HP)),          # b2
            shared((HP, CP)),         # wl_a (acts on h1 half)
            shared((HP, CP)),         # wl_b (acts on h2 half)
            shared((1, CP)),          # bl
        ],
        out_specs=batched((NB, CP)),
        compiler_params=pltpu.CompilerParams(
            dimension_semantics=("parallel",),
            vmem_limit_bytes=vmem_limit,
        ),
        cost_estimate=cost,
    )(adj_p, x_p, w1_rel, w1_root, b1, w2_rel, w2_root, b2, wl_a, wl_b, bl)

    # Unpack per-subgraph rows / real class columns.
    return out[blk[:, None], rows, :C]                        # [B, N, C]


def reference_forward(adj, x, p):
    """Pure-JAX f32 reference for one subgraph."""
    agg1 = adj @ x
    h1 = jax.nn.relu(agg1 @ p["w1_rel"] + x @ p["w1_root"] + p["b1"])
    agg2 = adj @ h1
    h2 = jax.nn.relu(agg2 @ p["w2_rel"] + h1 @ p["w2_root"] + p["b2"])
    logits = h1 @ p["wl_a"] + h2 @ p["wl_b"] + p["bl"]
    return jax.nn.log_softmax(logits, axis=-1)


if __name__ == "__main__":
    # Small shapes consistent with the module's forward.
    B = 16                 # sampled subgraphs (packed 8-per-block -> 2 grid steps)
    N = 16                 # nodes per subgraph
    F_IN = 8               # num_node_features
    H = 32                 # hidden_channels
    C = 4                  # num_classes
    E = 48                 # edges per subgraph

    key = jax.random.PRNGKey(0)
    keys = jax.random.split(key, 12)

    x = jax.random.normal(keys[0], (B, N, F_IN), dtype=jnp.float32)
    src = jax.random.randint(keys[1], (B, E), 0, N)
    dst = jax.random.randint(keys[2], (B, E), 0, N)

    scale = 0.1
    params = {
        # GraphConv1: lin_rel (with bias) + lin_root (no bias)
        "w1_rel":  scale * jax.random.normal(keys[3], (F_IN, H), dtype=jnp.float32),
        "w1_root": scale * jax.random.normal(keys[4], (F_IN, H), dtype=jnp.float32),
        "b1":      scale * jax.random.normal(keys[5], (1, H), dtype=jnp.float32),
        # GraphConv2
        "w2_rel":  scale * jax.random.normal(keys[6], (H, H), dtype=jnp.float32),
        "w2_root": scale * jax.random.normal(keys[7], (H, H), dtype=jnp.float32),
        "b2":      scale * jax.random.normal(keys[8], (1, H), dtype=jnp.float32),
        # Final Linear(2H -> C), stored split into the h1/h2 halves
        "wl_a":    scale * jax.random.normal(keys[9],  (H, C), dtype=jnp.float32),
        "wl_b":    scale * jax.random.normal(keys[10], (H, C), dtype=jnp.float32),
        "bl":      scale * jax.random.normal(keys[11], (1, C), dtype=jnp.float32),
    }

    out = saint_forward(x, src, dst, params)
    out = jax.block_until_ready(out)

    # Pure-JAX f32 reference using per-subgraph dense adjacency.
    def dense_adj(s, d):
        a = jnp.zeros((N, N), dtype=jnp.float32)
        return a.at[d, s].add(1.0)            # aggr='add', edge j->i (source_to_target)

    adj_ref = jax.vmap(dense_adj)(src, dst)
    ref = jax.vmap(lambda a, xx: reference_forward(a, xx, params))(adj_ref, x)

    assert out.shape == (B, N, C)
    # bf16 matmul inputs with f32 accumulation -> small numerical drift vs f32 ref.
    assert jnp.allclose(out, ref, atol=7.5e-2, rtol=7.5e-2), (
        f"max abs err {jnp.max(jnp.abs(out - ref))}")

    print("KERNEL_OK")
</pallas_src>

<mosaic_0001>
module attributes {stable_mosaic.version = 11 : i64} {
  func.func @saint_kernel(%arg0: i32, %arg1: memref<1x128x128xbf16, #tpu.memory_space<vmem>>, %arg2: memref<1x128x128xbf16, #tpu.memory_space<vmem>>, %arg3: memref<128x128xbf16, #tpu.memory_space<vmem>>, %arg4: memref<128x128xbf16, #tpu.memory_space<vmem>>, %arg5: memref<1x128xf32, #tpu.memory_space<vmem>>, %arg6: memref<128x128xbf16, #tpu.memory_space<vmem>>, %arg7: memref<128x128xbf16, #tpu.memory_space<vmem>>, %arg8: memref<1x128xf32, #tpu.memory_space<vmem>>, %arg9: memref<128x128xbf16, #tpu.memory_space<vmem>>, %arg10: memref<128x128xbf16, #tpu.memory_space<vmem>>, %arg11: memref<1x128xf32, #tpu.memory_space<vmem>>, %arg12: memref<1x128x128xf32, #tpu.memory_space<vmem>>) attributes {dimension_semantics = [#tpu.dimension_semantics<parallel>], iteration_bounds = array<i64: 2>, scalar_prefetch = 0 : i64, scratch_operands = 0 : i64, tpu.core_type = #tpu.core_type<tc>, window_params = [{transform_indices = @transform_0, window_bounds = array<i64: 1, 128, 128>}, {transform_indices = @transform_1, window_bounds = array<i64: 1, 128, 128>}, {pipeline_mode = #tpu.pipeline_mode<synchronous>, transform_indices = @transform_2, window_bounds = array<i64: 128, 128>}, {pipeline_mode = #tpu.pipeline_mode<synchronous>, transform_indices = @transform_3, window_bounds = array<i64: 128, 128>}, {pipeline_mode = #tpu.pipeline_mode<synchronous>, transform_indices = @transform_4, window_bounds = array<i64: 1, 128>}, {pipeline_mode = #tpu.pipeline_mode<synchronous>, transform_indices = @transform_5, window_bounds = array<i64: 128, 128>}, {pipeline_mode = #tpu.pipeline_mode<synchronous>, transform_indices = @transform_6, window_bounds = array<i64: 128, 128>}, {pipeline_mode = #tpu.pipeline_mode<synchronous>, transform_indices = @transform_7, window_bounds = array<i64: 1, 128>}, {pipeline_mode = #tpu.pipeline_mode<synchronous>, transform_indices = @transform_8, window_bounds = array<i64: 128, 128>}, {pipeline_mode = #tpu.pipeline_mode<synchronous>, transform_indices = @transform_9, window_bounds = array<i64: 128, 128>}, {pipeline_mode = #tpu.pipeline_mode<synchronous>, transform_indices = @transform_10, window_bounds = array<i64: 1, 128>}, {transform_indices = @transform_11, window_bounds = array<i64: 1, 128, 128>}]} {
    %c0 = arith.constant 0 : index
    %c0_0 = arith.constant 0 : index
    %c0_1 = arith.constant 0 : index
    %0 = vector.load %arg1[%c0, %c0_0, %c0_1] : memref<1x128x128xbf16, #tpu.memory_space<vmem>>, vector<1x128x128xbf16>
    %1 = vector.shape_cast %0 : vector<1x128x128xbf16> to vector<128x128xbf16>
    %c0_2 = arith.constant 0 : index
    %c0_3 = arith.constant 0 : index
    %c0_4 = arith.constant 0 : index
    %2 = vector.load %arg2[%c0_2, %c0_3, %c0_4] : memref<1x128x128xbf16, #tpu.memory_space<vmem>>, vector<1x128x128xbf16>
    %3 = vector.shape_cast %2 : vector<1x128x128xbf16> to vector<128x128xbf16>
    %cst = arith.constant dense<0.000000e+00> : vector<128x128xf32>
    %4 = tpu.matmul %1, %3, %cst {dimension_numbers = #tpu.dot_dimension_numbers<[1], [0], [0], [1], [0, 0, 1, 1], [], []>} : vector<128x128xbf16>, vector<128x128xbf16>, vector<128x128xf32> -> vector<128x128xf32>
    %5 = arith.truncf %4 : vector<128x128xf32> to vector<128x128xbf16>
    %c0_5 = arith.constant 0 : index
    %c0_6 = arith.constant 0 : index
    %6 = vector.load %arg3[%c0_5, %c0_6] : memref<128x128xbf16, #tpu.memory_space<vmem>>, vector<128x128xbf16>
    %cst_7 = arith.constant dense<0.000000e+00> : vector<128x128xf32>
    %7 = tpu.matmul %5, %6, %cst_7 {dimension_numbers = #tpu.dot_dimension_numbers<[1], [0], [0], [1], [0, 0, 1, 1], [], []>} : vector<128x128xbf16>, vector<128x128xbf16>, vector<128x128xf32> -> vector<128x128xf32>
    %c0_8 = arith.constant 0 : index
    %c0_9 = arith.constant 0 : index
    %8 = vector.load %arg4[%c0_8, %c0_9] : memref<128x128xbf16, #tpu.memory_space<vmem>>, vector<128x128xbf16>
    %cst_10 = arith.constant dense<0.000000e+00> : vector<128x128xf32>
    %9 = tpu.matmul %3, %8, %cst_10 {dimension_numbers = #tpu.dot_dimension_numbers<[1], [0], [0], [1], [0, 0, 1, 1], [], []>} : vector<128x128xbf16>, vector<128x128xbf16>, vector<128x128xf32> -> vector<128x128xf32>
    %10 = arith.addf %7, %9 : vector<128x128xf32>
    %c0_11 = arith.constant 0 : index
    %c0_12 = arith.constant 0 : index
    %11 = vector.load %arg5[%c0_11, %c0_12] : memref<1x128xf32, #tpu.memory_space<vmem>>, vector<1x128xf32>
    %12 = vector.broadcast %11 : vector<1x128xf32> to vector<128x128xf32>
    %13 = arith.addf %10, %12 : vector<128x128xf32>
    %cst_13 = arith.constant 0.000000e+00 : f32
    %14 = vector.broadcast %cst_13 : f32 to vector<128x128xf32>
    %15 = arith.maximumf %13, %14 : vector<128x128xf32>
    %16 = arith.truncf %15 : vector<128x128xf32> to vector<128x128xbf16>
    %cst_14 = arith.constant dense<0.000000e+00> : vector<128x128xf32>
    %17 = tpu.matmul %1, %16, %cst_14 {dimension_numbers = #tpu.dot_dimension_numbers<[1], [0], [0], [1], [0, 0, 1, 1], [], []>} : vector<128x128xbf16>, vector<128x128xbf16>, vector<128x128xf32> -> vector<128x128xf32>
    %18 = arith.truncf %17 : vector<128x128xf32> to vector<128x128xbf16>
    %c0_15 = arith.constant 0 : index
    %c0_16 = arith.constant 0 : index
    %19 = vector.load %arg6[%c0_15, %c0_16] : memref<128x128xbf16, #tpu.memory_space<vmem>>, vector<128x128xbf16>
    %cst_17 = arith.constant dense<0.000000e+00> : vector<128x128xf32>
    %20 = tpu.matmul %18, %19, %cst_17 {dimension_numbers = #tpu.dot_dimension_numbers<[1], [0], [0], [1], [0, 0, 1, 1], [], []>} : vector<128x128xbf16>, vector<128x128xbf16>, vector<128x128xf32> -> vector<128x128xf32>
    %c0_18 = arith.constant 0 : index
    %c0_19 = arith.constant 0 : index
    %21 = vector.load %arg7[%c0_18, %c0_19] : memref<128x128xbf16, #tpu.memory_space<vmem>>, vector<128x128xbf16>
    %cst_20 = arith.constant dense<0.000000e+00> : vector<128x128xf32>
    %22 = tpu.matmul %16, %21, %cst_20 {dimension_numbers = #tpu.dot_dimension_numbers<[1], [0], [0], [1], [0, 0, 1, 1], [], []>} : vector<128x128xbf16>, vector<128x128xbf16>, vector<128x128xf32> -> vector<128x128xf32>
    %23 = arith.addf %20, %22 : vector<128x128xf32>
    %c0_21 = arith.constant 0 : index
    %c0_22 = arith.constant 0 : index
    %24 = vector.load %arg8[%c0_21, %c0_22] : memref<1x128xf32, #tpu.memory_space<vmem>>, vector<1x128xf32>
    %25 = vector.broadcast %24 : vector<1x128xf32> to vector<128x128xf32>
    %26 = arith.addf %23, %25 : vector<128x128xf32>
    %cst_23 = arith.constant 0.000000e+00 : f32
    %27 = vector.broadcast %cst_23 : f32 to vector<128x128xf32>
    %28 = arith.maximumf %26, %27 : vector<128x128xf32>
    %29 = arith.truncf %28 : vector<128x128xf32> to vector<128x128xbf16>
    %c0_24 = arith.constant 0 : index
    %c0_25 = arith.constant 0 : index
    %30 = vector.load %arg9[%c0_24, %c0_25] : memref<128x128xbf16, #tpu.memory_space<vmem>>, vector<128x128xbf16>
    %cst_26 = arith.constant dense<0.000000e+00> : vector<128x128xf32>
    %31 = tpu.matmul %16, %30, %cst_26 {dimension_numbers = #tpu.dot_dimension_numbers<[1], [0], [0], [1], [0, 0, 1, 1], [], []>} : vector<128x128xbf16>, vector<128x128xbf16>, vector<128x128xf32> -> vector<128x128xf32>
    %c0_27 = arith.constant 0 : index
    %c0_28 = arith.constant 0 : index
    %32 = vector.load %arg10[%c0_27, %c0_28] : memref<128x128xbf16, #tpu.memory_space<vmem>>, vector<128x128xbf16>
    %cst_29 = arith.constant dense<0.000000e+00> : vector<128x128xf32>
    %33 = tpu.matmul %29, %32, %cst_29 {dimension_numbers = #tpu.dot_dimension_numbers<[1], [0], [0], [1], [0, 0, 1, 1], [], []>} : vector<128x128xbf16>, vector<128x128xbf16>, vector<128x128xf32> -> vector<128x128xf32>
    %34 = arith.addf %31, %33 : vector<128x128xf32>
    %c0_30 = arith.constant 0 : index
    %c0_31 = arith.constant 0 : index
    %35 = vector.load %arg11[%c0_30, %c0_31] : memref<1x128xf32, #tpu.memory_space<vmem>>, vector<1x128xf32>
    %36 = vector.broadcast %35 : vector<1x128xf32> to vector<128x128xf32>
    %37 = arith.addf %34, %36 : vector<128x128xf32>
    %38 = tpu.iota {dimensions = array<i32: 1>} : vector<128x128xi32>
    %c4_i32 = arith.constant 4 : i32
    %39 = vector.broadcast %c4_i32 : i32 to vector<128x128xi32>
    %40 = arith.cmpi slt, %38, %39 : vector<128x128xi32>
    %cst_32 = arith.constant -1.000000e+30 : f32
    %41 = vector.broadcast %cst_32 : f32 to vector<128x128xf32>
    %42 = arith.select %40, %37, %41 : vector<128x128xi1>, vector<128x128xf32>
    %cst_33 = arith.constant dense<0xFF800000> : vector<128xf32>
    %43 = vector.multi_reduction <maximumf>, %42, %cst_33 [1] : vector<128x128xf32> to vector<128xf32>
    %44 = vector.shape_cast %43 : vector<128xf32> to vector<128x1xf32>
    %45 = vector.broadcast %44 : vector<128x1xf32> to vector<128x128xf32>
    %46 = arith.subf %42, %45 : vector<128x128xf32>
    %47 = math.exp %46 : vector<128x128xf32>
    %cst_34 = arith.constant dense<0.000000e+00> : vector<128xf32>
    %48 = vector.multi_reduction <add>, %47, %cst_34 [1] : vector<128x128xf32> to vector<128xf32>
    %49 = vector.shape_cast %48 : vector<128xf32> to vector<128x1xf32>
    %50 = math.log %49 : vector<128x1xf32>
    %51 = vector.broadcast %50 : vector<128x1xf32> to vector<128x128xf32>
    %52 = arith.subf %46, %51 : vector<128x128xf32>
    %c0_35 = arith.constant 0 : index
    %c0_36 = arith.constant 0 : index
    %c0_37 = arith.constant 0 : index
    %53 = vector.load %arg12[%c0_35, %c0_36, %c0_37] : memref<1x128x128xf32, #tpu.memory_space<vmem>>, vector<1x128x128xf32>
    %54 = vector.shape_cast %53 : vector<1x128x128xf32> to vector<128x128xf32>
    %55 = vector.shape_cast %52 : vector<128x128xf32> to vector<1x128x128xf32>
    tpu.vector_store %arg12[%c0_35, %c0_36, %c0_37], %55 {strides = array<i32>} : memref<1x128x128xf32, #tpu.memory_space<vmem>>, vector<1x128x128xf32>,
    return
  }
  func.func @transform_0(%arg0: i32) -> (i32, i32, i32) {
    %c0_i32 = arith.constant 0 : i32
    %c0_i32_0 = arith.constant 0 : i32
    %c0_i32_1 = arith.constant 0 : i32
    return %arg0, %c0_i32, %c0_i32_0 : i32, i32, i32
  }
  func.func @transform_1(%arg0: i32) -> (i32, i32, i32) {
    %c0_i32 = arith.constant 0 : i32
    %c0_i32_0 = arith.constant 0 : i32
    %c0_i32_1 = arith.constant 0 : i32
    return %arg0, %c0_i32, %c0_i32_0 : i32, i32, i32
  }
  func.func @transform_2(%arg0: i32) -> (i32, i32) {
    %c0_i32 = arith.constant 0 : i32
    %c0_i32_0 = arith.constant 0 : i32
    %c0_i32_1 = arith.constant 0 : i32
    return %c0_i32, %c0_i32_0 : i32, i32
  }
  func.func @transform_3(%arg0: i32) -> (i32, i32) {
    %c0_i32 = arith.constant 0 : i32
    %c0_i32_0 = arith.constant 0 : i32
    %c0_i32_1 = arith.constant 0 : i32
    return %c0_i32, %c0_i32_0 : i32, i32
  }
  func.func @transform_4(%arg0: i32) -> (i32, i32) {
    %c0_i32 = arith.constant 0 : i32
    %c0_i32_0 = arith.constant 0 : i32
    %c0_i32_1 = arith.constant 0 : i32
    return %c0_i32, %c0_i32_0 : i32, i32
  }
  func.func @transform_5(%arg0: i32) -> (i32, i32) {
    %c0_i32 = arith.constant 0 : i32
    %c0_i32_0 = arith.constant 0 : i32
    %c0_i32_1 = arith.constant 0 : i32
    return %c0_i32, %c0_i32_0 : i32, i32
  }
  func.func @transform_6(%arg0: i32) -> (i32, i32) {
    %c0_i32 = arith.constant 0 : i32
    %c0_i32_0 = arith.constant 0 : i32
    %c0_i32_1 = arith.constant 0 : i32
    return %c0_i32, %c0_i32_0 : i32, i32
  }
  func.func @transform_7(%arg0: i32) -> (i32, i32) {
    %c0_i32 = arith.constant 0 : i32
    %c0_i32_0 = arith.constant 0 : i32
    %c0_i32_1 = arith.constant 0 : i32
    return %c0_i32, %c0_i32_0 : i32, i32
  }
  func.func @transform_8(%arg0: i32) -> (i32, i32) {
    %c0_i32 = arith.constant 0 : i32
    %c0_i32_0 = arith.constant 0 : i32
    %c0_i32_1 = arith.constant 0 : i32
    return %c0_i32, %c0_i32_0 : i32, i32
  }
  func.func @transform_9(%arg0: i32) -> (i32, i32) {
    %c0_i32 = arith.constant 0 : i32
    %c0_i32_0 = arith.constant 0 : i32
    %c0_i32_1 = arith.constant 0 : i32
    return %c0_i32, %c0_i32_0 : i32, i32
  }
  func.func @transform_10(%arg0: i32) -> (i32, i32) {
    %c0_i32 = arith.constant 0 : i32
    %c0_i32_0 = arith.constant 0 : i32
    %c0_i32_1 = arith.constant 0 : i32
    return %c0_i32, %c0_i32_0 : i32, i32
  }
  func.func @transform_11(%arg0: i32) -> (i32, i32, i32) {
    %c0_i32 = arith.constant 0 : i32
    %c0_i32_0 = arith.constant 0 : i32
    %c0_i32_1 = arith.constant 0 : i32
    return %arg0, %c0_i32, %c0_i32_0 : i32, i32, i32
  }
}

</mosaic_0001>

<bundles_post_ra>
// kernel: tpu_custom_call.1
= control target key start
LH: loop header
LB: loop body
LE: loop exit
PB: predicated region body
PF: predicated region fallthrough
CT: control target
= control target key end

     0   :  { %s4181_s0 = inlined_call_operand.hbm [shape: bf16[2,128,128], index: 0, kind: input, shape index: {}]   ;;  %s4182_s1 = inlined_call_operand.hbm [shape: bf16[2,128,128], index: 1, kind: input, shape index: {}]   ;;  %s4183_s2 = inlined_call_operand.hbm [shape: bf16[128,128], index: 2, kind: input, shape index: {}]   ;;  %s4184_s3 = inlined_call_operand.hbm [shape: bf16[128,128], index: 3, kind: input, shape index: {}]   ;;  %s4185_s4 = inlined_call_operand.vmem [shape: f32[1,128], index: 4, kind: input, shape index: {}]   ;;  %s4186_s5 = inlined_call_operand.hbm [shape: bf16[128,128], index: 5, kind: input, shape index: {}]   ;;  %s4187_s6 = inlined_call_operand.hbm [shape: bf16[128,128], index: 6, kind: input, shape index: {}]   ;;  %s4188_s7 = inlined_call_operand.vmem [shape: f32[1,128], index: 7, kind: input, shape index: {}]   ;;  %s4189_s8 = inlined_call_operand.hbm [shape: bf16[128,128], index: 8, kind: input, shape index: {}]   ;;  %s4190_s9 = inlined_call_operand.hbm [shape: bf16[128,128], index: 9, kind: input, shape index: {}]   ;;  %s4191_s10 = inlined_call_operand.vmem [shape: f32[1,128], index: 10, kind: input, shape index: {}]   ;;  %s4192_s11 = inlined_call_operand.hbm [shape: f32[2,128,128], index: 11, kind: output, shape index: {}]  }
   0x1   :  { %4201 = sst [smem:[#allocation24_spill]] %s4181_s0 }
   0x2   :  { %4202 = sst [smem:[#allocation25_spill]] %s4183_s2 }
   0x3   :  { %4203 = sst [smem:[#allocation26_spill]] %s4184_s3 }
   0x4   :  { %4204 = sst [smem:[#allocation27_spill]] %s4186_s5 }
   0x5   :  { %4205 = sst [smem:[#allocation28_spill]] %s4187_s6 }
   0x6   :  { %4206 = sst [smem:[#allocation29_spill]] %s4188_s7 }
   0x7   :  { %4207 = sst [smem:[#allocation30_spill]] %s4191_s10 }
   0x8   :  { %4208 = sst [smem:[#allocation31_spill]] %s4192_s11 }
   0x9   :  { %16 = vsyncpa [#allocation3], 0 }
   0xa   :  { %18 = vsyncpa [#allocation3 + $0x1], 0 }
   0xb   :  { %19 = vsyncpa [#allocation6], 0 }
   0xc   :  { %21 = vsyncpa [#allocation6 + $0x1], 0 }
   0xd   :  { %22 = vsyncpa [#allocation9], 0 }
   0xe   :  { %23 = vsyncpa [#allocation12], 0 }
   0xf   :  { %24 = vsyncpa [#allocation15], 0 }
  0x10   :  { %25 = vsyncpa [#allocation4], 0 }
  0x11   :  { %27 = vsyncpa [#allocation4 + $0x1], 0  ;;  %s3481_s17 = smov 0   ;;  %s3483_s18 = smov 0  }
  0x12   :  { %s3485_s19 = smov 0   ;;  %s3487_s20 = smov 0  }
  0x13 LB: > { %s3408_s21 = smov [#allocation7]   ;;  %s3502_s23 = sadd.s32 4294967295, %s3406_s20   ;;  %s3406_s20 = sphi %s3487_s20, %s4243_s20   ;;  %s3402_s19 = sphi %s3485_s19, %s4242_s19   ;;  %s3398_s18 = sphi %s3483_s18, %s4241_s18   ;;  %s3394_s17 = sphi %s3481_s17, %s4240_s17  }
  0x14   : > { %s317_s22 = sshll.u32 %s3408_s21, 4  ;;  %p2317_p0 = scmp.ge.s32.totalorder %s3406_s20, 1  ;;  %s3507_s22 = int_to_ptr.vmem [resolvable:$true] %s317_s22 }
  0x15   : > { %p4194_p1 = scmp.eq.s32.totalorder %s3502_s23, 0  ;;  %p305_p2 = scmp.lt.s32.totalorder %s3406_s20, 3 }
  0x16   : > { %s3409_s25 = smov [#allocation8]   ;;  %s3410_s28 = smov [#allocation11]  }
  0x17   : > { %p3509_p3 = pnand %p2317_p0, %p305_p2  ;;  %s330_s26 = sshll.u32 %s3409_s25, 4  ;;  %s3522_s26 = int_to_ptr.vmem [resolvable:$true] %s330_s26 }
  0x18   : > { %s359_s29 = sshll.u32 %s3410_s28, 4  ;;  %s4211_s2 = sld [smem:[#allocation25_spill]]  ;;  %s3524_s29 = int_to_ptr.vmem [resolvable:$true] %s359_s29 }
  0x19   : > { %s4209_s24 = scalar_select %p3509_p3, 1, 0 }
  0x1a   : > { %p2878_p5 = pneg %p3509_p3 }
  0x1c   : > { %p3518_p6 = pnand %p2878_p5, %p4194_p1 }
  0x1e   : > { %s3092_s13 = scalar_lea.hbm %s4211_s2, 1024  ;;  %p3534_p8 = pneg %p3518_p6 }
  0x1f   : > { %p3093_p7 = scmp.ne.s32.totalorder %s4211_s2, %s3092_s13  ;;  %p3099_p11 = scmp.lt.u32.totalorder %s3092_s13, %s4211_s2 }
  0x21   : > { %p3095_p9 = pnand %p3534_p8, %p3093_p7 }
  0x23   : > { %p3096_p10 = pneg %p3095_p9 }
  0x25   : > { %p3101_p12 = pnand %p3099_p11, %p3096_p10 }
  0x27   : > { %3104 = shalt.err (!%p3101_p12)
}
  0x28   : > { %s3105_s28 = scalar_lea.vmem %s3507_s22, 1024  ;;  %p3113_p5 = scmp.lt.s32.totalorder %s3507_s22, %s3507_s22 }
  0x29   : > { %p3106_p13 = scmp.ne.s32.totalorder %s3507_s22, %s3105_s28  ;;  %p3114_p4 = scmp.lt.s32.totalorder %s3105_s28, %s3105_s28 }
  0x2b   : > { %p3108_p0 = pnand %p3106_p13, %p3534_p8  ;;  %p3115_p7 = por %p3114_p4, %p3113_p5 }
  0x2d   : > { %p3109_p2 = pneg %p3108_p0 }
  0x2f   : > { %p3116_p9 = pnand %p3115_p7, %p3109_p2 }
  0x31   : > { %3119 = shalt.err (!%p3116_p9)
}
  0x32   : > { %s4196_s30 = smov 64   ;;  %s4198_s12 = smov 4  }
  0x33   : > { %2881 = dma.hbm_to_vmem [thread:$0]  (!%p3518_p6), %s4211_s2, 1024, %s3507_s22, [#allocation6], %s4196_s30, %s4196_s30, %s4198_s12  }
  0x34   : > { %s4213_s3 = sld [smem:[#allocation26_spill]] }
  0x3a   : > { %s3120_s25 = scalar_lea.hbm %s4213_s3, 1024 }
  0x3b   : > { %p3121_p4 = scmp.ne.s32.totalorder %s4213_s3, %s3120_s25  ;;  %p3127_p12 = scmp.lt.u32.totalorder %s3120_s25, %s4213_s3 }
  0x3d   : > { %p3123_p10 = pnand %p3121_p4, %p3534_p8 }
  0x3f   : > { %p3124_p11 = pneg %p3123_p10 }
  0x41   : > { %p3129_p13 = pnand %p3127_p12, %p3124_p11 }
  0x43   : > { %3132 = shalt.err (!%p3129_p13)
}
  0x44   : > { %s3133_s22 = scalar_lea.vmem %s3522_s26, 1024  ;;  %p3141_p7 = scmp.lt.s32.totalorder %s3522_s26, %s3522_s26 }
  0x45   : > { %p3134_p0 = scmp.ne.s32.totalorder %s3522_s26, %s3133_s22  ;;  %p3142_p9 = scmp.lt.s32.totalorder %s3133_s22, %s3133_s22 }
  0x47   : > { %p3136_p2 = pnand %p3134_p0, %p3534_p8  ;;  %p3143_p4 = por %p3142_p9, %p3141_p7 }
  0x49   : > { %p3137_p5 = pneg %p3136_p2 }
  0x4b   : > { %p3144_p10 = pnand %p3143_p4, %p3137_p5 }
  0x4d   : > { %3147 = shalt.err (!%p3144_p10)
}
  0x4e   : > { %2884 = dma.hbm_to_vmem [thread:$0]  (!%p3518_p6), %s4213_s3, 1024, %s3522_s26, [#allocation9], %s4196_s30, %s4196_s30, %s4198_s12  }
  0x4f   : > { %s4214_s6 = sld [smem:[#allocation28_spill]] }
  0x55   : > { %s3148_s14 = scalar_lea.hbm %s4214_s6, 1024 }
  0x56   : > { %p3149_p11 = scmp.ne.s32.totalorder %s4214_s6, %s3148_s14  ;;  %p3155_p0 = scmp.lt.u32.totalorder %s3148_s14, %s4214_s6 }
  0x58   : > { %p3151_p12 = pnand %p3149_p11, %p3534_p8 }
  0x5a   : > { %p3152_p13 = pneg %p3151_p12 }
  0x5c   : > { %p3157_p2 = pnand %p3155_p0, %p3152_p13 }
  0x5e   : > { %3160 = shalt.err (!%p3157_p2)
}
  0x5f   : > { %s3161_s26 = scalar_lea.vmem %s3524_s29, 1024  ;;  %p3169_p4 = scmp.lt.s32.totalorder %s3524_s29, %s3524_s29 }
  0x60   : > { %p3162_p5 = scmp.ne.s32.totalorder %s3524_s29, %s3161_s26  ;;  %p3170_p10 = scmp.lt.s32.totalorder %s3161_s26, %s3161_s26 }
  0x62   : > { %p3164_p7 = pnand %p3162_p5, %p3534_p8  ;;  %p3171_p11 = por %p3170_p10, %p3169_p4 }
  0x64   : > { %p3165_p9 = pneg %p3164_p7 }
  0x66   : > { %p3172_p12 = pnand %p3171_p11, %p3165_p9 }
  0x68   : > { %3175 = shalt.err (!%p3172_p12)
}
  0x69   : > { %2890 = dma.hbm_to_vmem [thread:$0]  (!%p3518_p6), %s4214_s6, 1024, %s3524_s29, [#allocation12], %s4196_s30, %s4196_s30, %s4198_s12  }
  0x6a   : > { %s3413_s10 = smov [#allocation10]   ;;  %s3414_s13 = smov [#allocation13]  }
  0x6b   : > { %s346_s11 = sshll.u32 %s3413_s10, 4  ;;  %s375_s14 = sshll.u32 %s3414_s13, 4  ;;  %s347_s11 = int_to_ptr.vmem [resolvable:$true] %s346_s11  ;;  %s376_s14 = int_to_ptr.vmem [resolvable:$true] %s375_s14 }
  0x6c   : > { %s4215_s5 = sld [smem:[#allocation27_spill]] }
  0x72   : > { %s3176_s25 = scalar_lea.hbm %s4215_s5, 1024 }
  0x73   : > { %p3177_p13 = scmp.ne.s32.totalorder %s4215_s5, %s3176_s25  ;;  %p3183_p5 = scmp.lt.u32.totalorder %s3176_s25, %s4215_s5 }
  0x75   : > { %p3179_p0 = pnand %p3177_p13, %p3534_p8 }
  0x77   : > { %p3180_p2 = pneg %p3179_p0 }
  0x79   : > { %p3185_p7 = pnand %p3183_p5, %p3180_p2 }
  0x7b   : > { %3188 = shalt.err (!%p3185_p7)
}
  0x7c   : > { %s3189_s29 = scalar_lea.vmem %s347_s11, 1024  ;;  %p3197_p11 = scmp.lt.s32.totalorder %s347_s11, %s347_s11 }
  0x7d   : > { %p3190_p9 = scmp.ne.s32.totalorder %s347_s11, %s3189_s29  ;;  %p3198_p12 = scmp.lt.s32.totalorder %s3189_s29, %s3189_s29 }
  0x7f   : > { %p3192_p4 = pnand %p3190_p9, %p3534_p8  ;;  %p3199_p1 = por %p3198_p12, %p3197_p11 }
  0x81   : > { %p3193_p10 = pneg %p3192_p4 }
  0x83   : > { %p3200_p3 = pnand %p3199_p1, %p3193_p10 }
  0x85   : > { %3203 = shalt.err (!%p3200_p3)
}
  0x86   : > { %2887 = dma.hbm_to_vmem [thread:$0]  (!%p3518_p6), %s4215_s5, 1024, %s347_s11, [#allocation9], %s4196_s30, %s4196_s30, %s4198_s12  }
  0x87   : > { %s3204_s15 = scalar_lea.hbm %s4189_s8, 1024 }
  0x88   : > { %p3205_p1 = scmp.ne.s32.totalorder %s4189_s8, %s3204_s15  ;;  %p3211_p0 = scmp.lt.u32.totalorder %s3204_s15, %s4189_s8 }
  0x8a   : > { %p3207_p3 = pnand %p3205_p1, %p3534_p8 }
  0x8c   : > { %p3208_p13 = pneg %p3207_p3 }
  0x8e   : > { %p3213_p2 = pnand %p3211_p0, %p3208_p13 }
  0x90   : > { %3216 = shalt.err (!%p3213_p2)
}
  0x91   : > { %s3217_s22 = scalar_lea.vmem %s376_s14, 1024  ;;  %p3225_p4 = scmp.lt.s32.totalorder %s376_s14, %s376_s14 }
  0x92   : > { %p3218_p5 = scmp.ne.s32.totalorder %s376_s14, %s3217_s22  ;;  %p3226_p10 = scmp.lt.s32.totalorder %s3217_s22, %s3217_s22 }
  0x94   : > { %p3220_p7 = pnand %p3218_p5, %p3534_p8  ;;  %p3227_p11 = por %p3226_p10, %p3225_p4 }
  0x96   : > { %p3221_p9 = pneg %p3220_p7 }
  0x98   : > { %p3228_p12 = pnand %p3227_p11, %p3221_p9 }
  0x9a   : > { %3231 = shalt.err (!%p3228_p12)
}
  0x9b   : > { %2893 = dma.hbm_to_vmem [thread:$0]  (!%p3518_p6), %s4189_s8, 1024, %s376_s14, [#allocation12], %s4196_s30, %s4196_s30, %s4198_s12  }
  0x9c   : > { %s3415_s2 = smov [#allocation14]   ;;  %s3232_s15 = scalar_lea.hbm %s4190_s9, 1024 }
  0x9d   : > { %s388_s7 = sshll.u32 %s3415_s2, 4  ;;  %p3233_p1 = scmp.ne.s32.totalorder %s4190_s9, %s3232_s15  ;;  %s389_s7 = int_to_ptr.vmem [resolvable:$true] %s388_s7 }
  0x9e   : > { %p3239_p0 = scmp.lt.u32.totalorder %s3232_s15, %s4190_s9 }
  0x9f   : > { %p3235_p3 = pnand %p3233_p1, %p3534_p8 }
  0xa1   : > { %p3236_p13 = pneg %p3235_p3 }
  0xa3   : > { %p3241_p2 = pnand %p3239_p0, %p3236_p13 }
  0xa5   : > { %3244 = shalt.err (!%p3241_p2)
}
  0xa6   : > { %s3245_s14 = scalar_lea.vmem %s389_s7, 1024  ;;  %p3253_p4 = scmp.lt.s32.totalorder %s389_s7, %s389_s7 }
  0xa7   : > { %p3246_p5 = scmp.ne.s32.totalorder %s389_s7, %s3245_s14  ;;  %p3254_p10 = scmp.lt.s32.totalorder %s3245_s14, %s3245_s14 }
  0xa9   : > { %p3248_p7 = pnand %p3246_p5, %p3534_p8  ;;  %p3255_p11 = por %p3254_p10, %p3253_p4 }
  0xab   : > { %p3249_p9 = pneg %p3248_p7 }
  0xad   : > { %p3256_p12 = pnand %p3255_p11, %p3249_p9 }
  0xaf   : > { %3259 = shalt.err (!%p3256_p12)
}
  0xb0   : > { %2896 = dma.hbm_to_vmem [thread:$0]  (!%p3518_p6), %s4190_s9, 1024, %s389_s7, [#allocation15], %s4196_s30, %s4196_s30, %s4198_s12  }
  0xb1   : > { %s2316_s27 = sadd.s32 4294967294, %s3406_s20   ;;  %s3675_s16 = sadd.s32 1, %s3406_s20  }
  0xb2   : > { %s37_s29 = ssub.s32 %s3406_s20, %s3675_s16  ;;  %s40_s2 = sadd.s32 1, %s3402_s19 }
  0xb3   : > { %p38_p8 = scmp.eq.s32.totalorder %s37_s29, 0  ;;  %p47_p1 = scmp.ne.s32.totalorder %s3402_s19, %s3398_s18 }
  0xb4   : > { %p48_p3 = scmp.eq.s32.totalorder %s3406_s20, 0  ;;  %p53_p13 = scmp.ne.s32.totalorder %s3398_s18, %s3394_s17 }
  0xb5   : > { %s3686_s10 = scalar_select %p38_p8, %s3402_s19, %s40_s2  }
  0xb6   : > { %p3688_p0 = por %p48_p3, %p47_p1  ;;  %p4217_p2 = scmp.eq.s32.totalorder %s3502_s23, 0 }
  0xb7   : > { %p292_p5 = scmp.eq.s32.totalorder %s3502_s23, 1  ;;  %p298_p7 = scmp.eq.s32.totalorder %s2316_s27, 1 }
  0xb8   : > { %p3694_p6 = por %p4217_p2, %p53_p13  ;;  %p2914_p9 = scmp.lt.s32.totalorder %s3406_s20, 2 }
  0xb9   : > { %s405_s15 = sand.u32 1, %s3402_s19   ;;  %p3701_p4 = por %p292_p5, %p47_p1 }
  0xba   : > { %p3705_p10 = por %p298_p7, %p53_p13  ;;  %s2325_s28 = sshll.u32 %s405_s15, 6 }
  0xbb   : > { %s4219_s21 = scalar_select %p3701_p4, 1, 0 }
  0xbc   : > { %s4220_s25 = scalar_select %p3705_p10, 1, 0 }
  0xbd   : > { %s2413_s26 = sshll.u32 %s3406_s20, 10  ;;  %s4221_s0 = sld [smem:[#allocation24_spill]] }
  0xbe   : > { %s409_s27 = scalar_lea.vmem [#allocation2], %s2325_s28  ;;  %p3719_p11 = pnand %p2914_p9, %p3688_p0 }
  0xbf   : > { %s416_s29 = sshll.u32 %s409_s27, 4  ;;  %s3726_s14 = scalar_lea.hbm %s4182_s1, %s2413_s26  ;;  %s3715_s29 = int_to_ptr.vmem [resolvable:$true] %s416_s29 }
  0xc0   : > { %s430_s22 = scalar_lea.vmem [#allocation5], %s2325_s28  ;;  %s3730_s5 = scalar_lea.sflag [#allocation3], %s405_s15 }
  0xc1   : > { %s3728_s3 = sshll.u32 %s430_s22, 4  ;;  %p3262_p8 = pneg %p3719_p11  ;;  %s3762_s3 = int_to_ptr.vmem [resolvable:$true] %s3728_s3 }
  0xc3   : > { %s3713_s11 = scalar_lea.hbm %s4221_s0, %s2413_s26  ;;  %s3265_s30 = scalar_lea.hbm %s4221_s0, 2048 }
  0xc4   : > { %s3260_s27 = scalar_lea.hbm %s3713_s11, 1024  ;;  %p3266_p13 = scmp.lt.u32.totalorder %s3713_s11, %s4221_s0 }
  0xc5   : > { %p3261_p12 = scmp.ne.s32.totalorder %s3713_s11, %s3260_s27  ;;  %p3267_p0 = scmp.lt.u32.totalorder %s3265_s30, %s3260_s27 }
  0xc6   : > { %p3269_p5 = scmp.lt.u32.totalorder %s3260_s27, %s3713_s11 }
  0xc7   : > { %p3263_p1 = pnand %p3262_p8, %p3261_p12  ;;  %p3268_p2 = por %p3267_p0, %p3266_p13 }
  0xc9   : > { %p3264_p3 = pneg %p3263_p1  ;;  %p3270_p7 = por %p3269_p5, %p3268_p2 }
  0xcb   : > { %p3271_p9 = pnand %p3270_p7, %p3264_p3 }
  0xcd   : > { %3274 = shalt.err (!%p3271_p9)
}
  0xce   : > { %s3275_s15 = scalar_lea.vmem %s3715_s29, 1024  ;;  %s3416_s6 = smov [#allocation2]  }
  0xcf   : > { %p3276_p12 = scmp.ne.s32.totalorder %s3715_s29, %s3275_s15  ;;  %s3280_s28 = sshll.u32 %s3416_s6, 4  ;;  %s3281_s28 = int_to_ptr.vmem [resolvable:$false] %s3280_s28 }
  0xd0   : > { %s3282_s22 = scalar_lea.vmem %s3281_s28, 2048  ;;  %p3283_p4 = scmp.lt.s32.totalorder %s3715_s29, %s3281_s28 }
  0xd1   : > { %p3278_p1 = pnand %p3276_p12, %p3262_p8  ;;  %p3284_p13 = scmp.lt.s32.totalorder %s3282_s22, %s3275_s15 }
  0xd3   : > { %p3279_p10 = pneg %p3278_p1  ;;  %p3285_p0 = por %p3284_p13, %p3283_p4 }
  0xd5   : > { %p3286_p2 = pnand %p3285_p0, %p3279_p10 }
  0xd7   : > { %3289 = shalt.err (!%p3286_p2)
}
  0xd8   : > { %s4223_s27 = smov 4   ;;  %s4224_s13 = smov 64  }
  0xd9   : > { %2900 = dma.hbm_to_vmem [thread:$0]  (!%p3719_p11), %s3713_s11, 1024, %s3715_s29, %s3730_s5, %s4224_s13, %s4224_s13, %s4223_s27  }
  0xda   : > { %s426_s30 = sand.u32 1, %s3406_s20   ;;  %s3290_s26 = scalar_lea.hbm %s3726_s14, 1024 }
  0xdb   : > { %s3765_s12 = scalar_lea.sflag [#allocation6], %s426_s30  ;;  %p3291_p4 = scmp.ne.s32.totalorder %s3726_s14, %s3290_s26 }
  0xdc   : > { %s3295_s28 = scalar_lea.hbm %s4182_s1, 2048  ;;  %p3296_p5 = scmp.lt.u32.totalorder %s3726_s14, %s4182_s1 }
  0xdd   : > { %p3293_p10 = pnand %p3291_p4, %p3262_p8  ;;  %p3297_p7 = scmp.lt.u32.totalorder %s3295_s28, %s3290_s26 }
  0xde   : > { %p3299_p12 = scmp.lt.u32.totalorder %s3290_s26, %s3726_s14 }
  0xdf   : > { %p3294_p3 = pneg %p3293_p10  ;;  %p3298_p9 = por %p3297_p7, %p3296_p5 }
  0xe1   : > { %p3300_p1 = por %p3299_p12, %p3298_p9 }
  0xe3   : > { %p3301_p13 = pnand %p3300_p1, %p3294_p3 }
  0xe5   : > { %3304 = shalt.err (!%p3301_p13)
}
  0xe6   : > { %s3305_s5 = scalar_lea.vmem %s3762_s3, 1024  ;;  %s3417_s11 = smov [#allocation5]  }
  0xe7   : > { %p3306_p0 = scmp.ne.s32.totalorder %s3762_s3, %s3305_s5  ;;  %s3310_s29 = sshll.u32 %s3417_s11, 4  ;;  %s3311_s29 = int_to_ptr.vmem [resolvable:$false] %s3310_s29 }
  0xe8   : > { %s3312_s0 = scalar_lea.vmem %s3311_s29, 2048  ;;  %p3313_p10 = scmp.lt.s32.totalorder %s3762_s3, %s3311_s29 }
  0xe9   : > { %p3308_p2 = pnand %p3306_p0, %p3262_p8  ;;  %p3314_p5 = scmp.lt.s32.totalorder %s3312_s0, %s3305_s5 }
  0xeb   : > { %p3309_p4 = pneg %p3308_p2  ;;  %p3315_p7 = por %p3314_p5, %p3313_p10 }
  0xed   : > { %p3316_p9 = pnand %p3315_p7, %p3309_p4 }
  0xef   : > { %3319 = shalt.err (!%p3316_p9)
}
  0xf0   : > { %2903 = dma.hbm_to_vmem [thread:$0]  (!%p3719_p11), %s3726_s14, 1024, %s3762_s3, %s3765_s12, %s4224_s13, %s4224_s13, %s4223_s27  }
  0xf1   : > { %p4225_p8 = scmp.ne.s32.totalorder %s4209_s24, 0 }
  0xf2   : > { %s3797_s30 = sand.u32 (!%p4225_p8), 1, %s3398_s18  }
  0xf3   : > { %449 = sbr.rel (%p4225_p8) target bundleno = 1819 (0x71b), region = 64  ;;  %s2332_s26 = sshll.u32 (!%p4225_p8), %s3797_s30, 6 }
  0xf4   : > { %s452_s15 = scalar_lea.sflag (!%p4225_p8), [#allocation3], %s3797_s30  ;;  %s3801_s6 = scalar_lea.vmem (!%p4225_p8), [#allocation2], %s2332_s26 }
  0xfa   : > { %3365 = dma.done.wait (%p3694_p6), %s452_s15, 1024  }
  0xfb   : > { %3367 = vsyncadd (%p3694_p6), %s452_s15, 4294966272  ;;  %s460_s3 = sand.u32 1, %s3502_s23   ;;  %s3808_s2 = scalar_lea.vmem [#allocation5], %s2332_s26 }
  0xfc   : > { %s461_s24 = scalar_lea.sflag [#allocation6], %s460_s3 }
  0xfd   : > { %3369 = dma.done.wait (%p3694_p6), %s461_s24, 1024  }
  0xfe   : > { %3371 = vsyncadd (%p3694_p6), %s461_s24, 4294966272  ;;  %p4226_p11 = scmp.eq.s32.totalorder %s3502_s23, 0 }
 0x100   : > { %3373 = dma.done.wait (%p4226_p11), [#allocation6], 1024   ;;  %p4227_p3 = pmov %p4226_p11 }
 0x102   : > { %3375 = vsyncadd (%p4227_p3), [#allocation6], 4294966272  ;;  %p4228_p12 = pmov %p4227_p3 }
 0x103   : > { %p4229_p1 = pmov %p4227_p3 }
 0x104   : > { %3377 = dma.done.wait (%p4228_p12), [#allocation9], 2048  }
 0x105   : > { %3379 = vsyncadd (%p4229_p1), [#allocation9], 4294965248  ;;  %p4230_p13 = pmov %p4229_p1 }
 0x106   : > { %p4231_p0 = pmov %p4229_p1 }
 0x107   : > { %3381 = dma.done.wait (%p4230_p13), [#allocation12], 2048  }
 0x108   : > { %3383 = vsyncadd (%p4231_p0), [#allocation12], 4294965248  ;;  %p4232_p6 = pmov %p4231_p0 }
 0x109   : > { %p4233_p2 = pmov %p4231_p0 }
 0x10a   : > { %3385 = dma.done.wait (%p4232_p6), [#allocation15], 1024  }
 0x10b   : > { %3387 = vsyncadd (%p4233_p2), [#allocation15], 4294966272  ;;  %v2964_v0 = vld [vmem:[%s3808_s2] sm:$0xff]   ;;  %v3832_v1 = vld [vmem:[%s3808_s2 + $0x8] sm:$0xff]   ;;  %s4234_s12 = sld [smem:[#allocation29_spill]]  ;;  %s4235_s5 = sld [smem:[#allocation30_spill]] }
 0x10c   : > { %2544 = vmatprep.subr.bf16.mxu0 %v2964_v0  ;;  %2592 = vmatprep.mubr.bf16.mxu1 %v2964_v0  ;;  %v3836_v2 = vld [vmem:[%s3808_s2 + $0x10] sm:$0xff]   ;;  %v3840_v3 = vld [vmem:[%s3808_s2 + $0x18] sm:$0xff]   ;;  %v3844_v4 = vld [vmem:[%s3801_s6] sm:$0xff]   ;;  %s2340_s11 = sshll.u32 %s3797_s30, 7  ;;  %s2415_s0 = sshll.u32 %s3502_s23, 11 }
 0x10d   : > { %2545 = vmatpush3.bf16.msra.mxu0 %v2964_v0  ;;  %2560 = vmatprep.mubr.bf16.mxu0 %v3844_v4  ;;  %v3850_v5 = vld [vmem:[%s3808_s2 + $0x20] sm:$0xff]   ;;  %v3854_v6 = vld [vmem:[%s3808_s2 + $0x28] sm:$0xff]   ;;  %v3859_v9 = vld [vmem:[%s3808_s2 + $0x30] sm:$0xff]   ;;  %s4097_s29 = scalar_lea.vmem [#allocation16], %s2340_s11  ;;  %s4236_s3 = sld [smem:[#allocation31_spill]] }
 0x10e   : > { %2546 = vmatprep.subr.bf16.mxu0 %v3832_v1  ;;  %v2980_v7 = vld [vmem:[#allocation8] sm:$0xff]   ;;  %v2981_v8 = vld [vmem:[#allocation8 + $0x8] sm:$0xff]   ;;  %v2982_v10 = vld [vmem:[#allocation8 + $0x10] sm:$0xff]   ;;  %s2163_s26 = sshll.u32 %s4097_s29, 4  ;;  %s2150_s23 = scalar_lea.sflag [#allocation4], %s3797_s30  ;;  %s4135_s26 = int_to_ptr.vmem [resolvable:$true] %s2163_s26 }
 0x10f   : > { %2576 = vmatprep.subr.bf16.mxu1 %v2980_v7  ;;  %v3864_v11 = vld [vmem:[%s3808_s2 + $0x38] sm:$0xff]   ;;  %v3870_v13 = vld [vmem:[%s3801_s6 + $0x8] sm:$0xff]   ;;  %v2984_v14 = vld [vmem:[#allocation8 + $0x20] sm:$0xff]   ;;  %s3320_s2 = scalar_lea.vmem %s4135_s26, 2048  ;;  %p4237_p10 = scmp.ne.s32.totalorder %s4219_s21, 0 }
 0x110   : > { %2577 = vmatpush3.bf16.msra.mxu1 %v2980_v7  ;;  %v2983_v12 = vld [vmem:[#allocation8 + $0x18] sm:$0xff]   ;;  %v3873_v15 = vld [vmem:[%s3801_s6 + $0x10] sm:$0xff]   ;;  %v2985_v16 = vld [vmem:[#allocation8 + $0x28] sm:$0xff]   ;;  %p3321_p4 = scmp.ne.s32.totalorder %s4135_s26, %s3320_s2  ;;  %s3418_s7 = smov [#allocation16]  }
 0x111   : > { %2547 = vmatpush3.bf16.msra.mxu0 %v3832_v1  ;;  %2578 = vmatprep.subr.bf16.mxu1 %v2981_v8  ;;  %v2986_v17 = vld [vmem:[#allocation8 + $0x30] sm:$0xff]   ;;  %v3879_v18 = vld [vmem:[%s3801_s6 + $0x18] sm:$0xff]   ;;  %v3882_v19 = vld [vmem:[%s3801_s6 + $0x20] sm:$0xff]   ;;  %s3324_s14 = sshll.u32 %s3418_s7, 4  ;;  %s3325_s14 = int_to_ptr.vmem [resolvable:$false] %s3324_s14 }
 0x112   : > { %2548 = vmatprep.subr.bf16.mxu0 %v3836_v2  ;;  %v2987_v20 = vld [vmem:[#allocation8 + $0x38] sm:$0xff]   ;;  %v2988_v21 = vld [vmem:[#allocation7] sm:$0xff]   ;;  %v3887_v22 = vld [vmem:[%s3801_s6 + $0x28] sm:$0xff]   ;;  %p3322_p5 = pnand %p3321_p4, %p4237_p10  ;;  %s3326_s27 = scalar_lea.vmem %s3325_s14, 4096 }
 0x113   : > { %v3890_v23 = vld [vmem:[%s3801_s6 + $0x30] sm:$0xff]   ;;  %v2989_v24 = vld [vmem:[#allocation7 + $0x8] sm:$0xff]   ;;  %v3897_v26 = vld [vmem:[%s3801_s6 + $0x38] sm:$0xff]   ;;  %s4133_s24 = scalar_lea.hbm %s4236_s3, %s2415_s0  ;;  %p3327_p9 = scmp.lt.s32.totalorder %s4135_s26, %s3325_s14 }
 0x114   : > { %2579 = vmatpush3.bf16.msra.mxu1 %v2981_v8  ;;  %v2990_v25 = vld [vmem:[#allocation7 + $0x10] sm:$0xff]   ;;  %v2991_v27 = vld [vmem:[#allocation7 + $0x18] sm:$0xff]   ;;  %v2992_v28 = vld [vmem:[#allocation7 + $0x20] sm:$0xff]   ;;  %p3323_p7 = pneg %p3322_p5  ;;  %p3328_p8 = scmp.lt.s32.totalorder %s3326_s27, %s3320_s2 }
 0x115   : > { %2549 = vmatpush3.bf16.msra.mxu0 %v3836_v2  ;;  %2580 = vmatprep.subr.bf16.mxu1 %v2982_v10  ;;  %v2993_v29 = vld [vmem:[#allocation7 + $0x28] sm:$0xff]   ;;  %v2994_v30 = vld [vmem:[#allocation7 + $0x30] sm:$0xff]   ;;  %v2995_v31 = vld [vmem:[#allocation7 + $0x38] sm:$0xff]  }
 0x116   : > { %2550 = vmatprep.subr.bf16.mxu0 %v3840_v3  ;;  %v2373_v56 = vld [vmem:[%s4185_s4] ss:$0 sm:$0xff]  ;;  %p3329_p11 = por %p3328_p8, %p3327_p9 }
 0x118   : > { %2581 = vmatpush3.bf16.msra.mxu1 %v2982_v10  ;;  %p3330_p3 = pnand %p3329_p11, %p3323_p7 }
 0x119   : > { %2551 = vmatpush3.bf16.msra.mxu0 %v3840_v3  ;;  %2582 = vmatprep.subr.bf16.mxu1 %v2983_v12 }
 0x11a   : > { %2552 = vmatprep.subr.bf16.mxu0 %v3850_v5 }
 0x11c   : > { %2583 = vmatpush3.bf16.msra.mxu1 %v2983_v12 }
 0x11d   : > { %2553 = vmatpush3.bf16.msra.mxu0 %v3850_v5  ;;  %2584 = vmatprep.subr.bf16.mxu1 %v2984_v14 }
 0x11e   : > { %2554 = vmatprep.subr.bf16.mxu0 %v3854_v6 }
 0x120   : > { %2585 = vmatpush3.bf16.msra.mxu1 %v2984_v14 }
 0x121   : > { %2555 = vmatpush3.bf16.msra.mxu0 %v3854_v6  ;;  %2586 = vmatprep.subr.bf16.mxu1 %v2985_v16 }
 0x122   : > { %2556 = vmatprep.subr.bf16.mxu0 %v3859_v9 }
 0x124   : > { %2587 = vmatpush3.bf16.msra.mxu1 %v2985_v16 }
 0x125   : > { %2557 = vmatpush3.bf16.msra.mxu0 %v3859_v9  ;;  %2588 = vmatprep.subr.bf16.mxu1 %v2986_v17 }
 0x126   : > { %2558 = vmatprep.subr.bf16.mxu0 %v3864_v11 }
 0x128   : > { %2589 = vmatpush3.bf16.msra.mxu1 %v2986_v17 }
 0x129   : > { %2559 = vmatpush3.bf16.msra.mxu0 %v3864_v11  ;;  %2590 = vmatprep.subr.bf16.mxu1 %v2987_v20 }
 0x12c   : > { %2561 = vmatmul.mubr.bf16.vlgmr.msra.gmra.mrb[0].mxu0 %v3870_v13  ;;  %2591 = vmatpush3.bf16.msra.mxu1 %v2987_v20 }
 0x12d   : > { %2564 = vmatprep.mubr.bf16.mxu0 %v3873_v15  ;;  %2608 = vmatprep.subr.bf16.mxu1 %v2988_v21 }
 0x12f   : > { %2593 = vmatmul.mubr.bf16.vlgmr.msra.gmra.mrb[0].mxu1 %v3832_v1 }
 0x130   : > { %2609 = vmatpush3.bf16.msra.mxu1 %v2988_v21  ;;  %2596 = vmatprep.mubr.bf16.mxu1 %v3836_v2 }
 0x131   : > { %2610 = vmatprep.subr.bf16.mxu1 %v2989_v24 }
 0x134   : > { %2565 = vmatmul.mubr.bf16.gmra.mrb[4].mxu0 %v3879_v18  ;;  %2611 = vmatpush3.bf16.msra.mxu1 %v2989_v24 }
 0x135   : > { %2568 = vmatprep.mubr.bf16.mxu0 %v3882_v19  ;;  %2612 = vmatprep.subr.bf16.mxu1 %v2990_v25 }
 0x137   : > { %2597 = vmatmul.mubr.bf16.gmra.mrb[4].mxu1 %v3840_v3 }
 0x138   : > { %2613 = vmatpush3.bf16.msra.mxu1 %v2990_v25  ;;  %2600 = vmatprep.mubr.bf16.mxu1 %v3850_v5 }
 0x139   : > { %2614 = vmatprep.subr.bf16.mxu1 %v2991_v27 }
 0x13c   : > { %2569 = vmatmul.mubr.bf16.gmra.mrb[8].mxu0 %v3887_v22  ;;  %2615 = vmatpush3.bf16.msra.mxu1 %v2991_v27 }
 0x13d   : > { %2572 = vmatprep.mubr.bf16.mxu0 %v3890_v23  ;;  %2616 = vmatprep.subr.bf16.mxu1 %v2992_v28 }
 0x13f   : > { %2601 = vmatmul.mubr.bf16.gmra.mrb[8].mxu1 %v3854_v6 }
 0x140   : > { %2617 = vmatpush3.bf16.msra.mxu1 %v2992_v28  ;;  %2604 = vmatprep.mubr.bf16.mxu1 %v3859_v9 }
 0x141   : > { %2618 = vmatprep.subr.bf16.mxu1 %v2993_v29 }
 0x144   : > { %2573 = vmatmul.mubr.bf16.gmra.mrb[12].mxu0 %v3897_v26  ;;  %2619 = vmatpush3.bf16.msra.mxu1 %v2993_v29 }
 0x145   : > { %2656 = vmatprep.mubr.bf16.mxu0 %v3844_v4  ;;  %2620 = vmatprep.subr.bf16.mxu1 %v2994_v30 }
 0x147   : > { %2605 = vmatmul.mubr.bf16.gmra.mrb[12].mxu1 %v3864_v11 }
 0x148   : > { %2621 = vmatpush3.bf16.msra.mxu1 %v2994_v30 }
 0x149   : > { %2622 = vmatprep.subr.bf16.mxu1 %v2995_v31 }
 0x14c   : > { %2623 = vmatpush3.bf16.msra.mxu1 %v2995_v31 }
 0x1ff   : > { %v2562_v32 = vpop.f32.mrb[0].mxu0 }
 0x200   : > { %v695_v33 = vpop.f32.mrb[1].mxu0 }
 0x201   : > { %v2563_v34 = vpop.f32.mrb[2].mxu0 }
 0x202   : > { %v759_v35 = vpack.c.bf16 %v2563_v34, %v2562_v32  ;;  %v698_v36 = vpop.f32.mrb[3].mxu0 }
 0x203   : > { %v758_v37 = vpack.c.bf16 %v698_v36, %v695_v33 }
 0x205   : > { %2624 = vmatprep.mubr.bf16.mxu1 %v758_v37 }
 0x206   : > { %2625 = vmatmul.mubr.bf16.vlgmr.msra.gmra.mrb[0].mxu1 %v759_v35 }
 0x207   : > { %v2566_v38 = vpop.f32.mrb[4].mxu0 }
 0x208   : > { %v711_v39 = vpop.f32.mrb[5].mxu0 }
 0x209   : > { %v2567_v40 = vpop.f32.mrb[6].mxu0 }
 0x20a   : > { %v761_v41 = vpack.c.bf16 %v2567_v40, %v2566_v38  ;;  %v714_v42 = vpop.f32.mrb[7].mxu0 }
 0x20b   : > { %v760_v43 = vpack.c.bf16 %v714_v42, %v711_v39 }
 0x20d   : > { %2628 = vmatprep.mubr.bf16.mxu1 %v760_v43 }
 0x20e   : > { %2629 = vmatmul.mubr.bf16.gmra.mrb[4].mxu1 %v761_v41 }
 0x20f   : > { %v2570_v44 = vpop.f32.mrb[8].mxu0 }
 0x210   : > { %v727_v45 = vpop.f32.mrb[9].mxu0 }
 0x211   : > { %v2571_v46 = vpop.f32.mrb[10].mxu0 }
 0x212   : > { %v763_v47 = vpack.c.bf16 %v2571_v46, %v2570_v44  ;;  %v730_v48 = vpop.f32.mrb[11].mxu0 }
 0x213   : > { %v762_v49 = vpack.c.bf16 %v730_v48, %v727_v45 }
 0x215   : > { %2632 = vmatprep.mubr.bf16.mxu1 %v762_v49 }
 0x216   : > { %2633 = vmatmul.mubr.bf16.gmra.mrb[8].mxu1 %v763_v47 }
 0x217   : > { %v2574_v50 = vpop.f32.mrb[12].mxu0 }
 0x218   : > { %v743_v51 = vpop.f32.mrb[13].mxu0 }
 0x219   : > { %v2575_v52 = vpop.f32.mrb[14].mxu0 }
 0x21a   : > { %v765_v53 = vpack.c.bf16 %v2575_v52, %v2574_v50  ;;  %v746_v54 = vpop.f32.mrb[15].mxu0 }
 0x21b   : > { %v764_v55 = vpack.c.bf16 %v746_v54, %v743_v51 }
 0x21d   : > { %2636 = vmatprep.mubr.bf16.mxu1 %v764_v55 }
 0x21e   : > { %2637 = vmatmul.mubr.bf16.gmra.mrb[12].mxu1 %v765_v53 }
 0x2d9   : > { %v2626_v57 = vpop.f32.mrb[0].mxu1 }
 0x2da   : > { %v1097_v58 = vadd.f32 %v2626_v57, %v2373_v56  ;;  %v1025_v59 = vpop.f32.mrb[1].mxu1  ;;  %v2996_v57 = vld [vmem:[#allocation11] sm:$0xff]  }
 0x2db   : > { %v1095_v60 = vadd.f32 %v2373_v56, %v1025_v59  ;;  %v2627_v61 = vpop.f32.mrb[2].mxu1  ;;  %v2999_v59 = vld [vmem:[#allocation11 + $0x18] sm:$0xff]  }
 0x2dc   : > { %v1098_v62 = vadd.f32 %v2627_v61, %v2373_v56  ;;  %v1028_v63 = vpop.f32.mrb[3].mxu1  ;;  %v1113_v1 = vmax.f32 %v1097_v58, 0.0  ;;  %v2998_v58 = vld [vmem:[#allocation11 + $0x10] sm:$0xff]   ;;  %v3001_v61 = vld [vmem:[#allocation11 + $0x28] sm:$0xff]  }
 0x2dd   : > { %v1096_v0 = vadd.f32 %v2373_v56, %v1028_v63  ;;  %v1111_v3 = vmax.f32 %v1095_v60, 0.0  ;;  %v3000_v60 = vld [vmem:[#allocation11 + $0x20] sm:$0xff]   ;;  %v3010_v63 = vld [vmem:[#allocation10 + $0x30] sm:$0xff]  }
 0x2de   : > { %v1114_v2 = vmax.f32 %v1098_v62, 0.0  ;;  %v3009_v62 = vld [vmem:[#allocation10 + $0x28] sm:$0xff]  }
 0x2df   : > { %v1112_v4 = vmax.f32 %v1096_v0, 0.0  ;;  %v3011_v0 = vld [vmem:[#allocation10 + $0x38] sm:$0xff]  }
 0x2e0   : > { %v3909_v5 = vpack.c.bf16 %v1114_v2, %v1113_v1  ;;  %v3012_v1 = vld [vmem:[#allocation14] sm:$0xff]   ;;  %v3013_v2 = vld [vmem:[#allocation14 + $0x8] sm:$0xff]  }
 0x2e1   : > { %v3911_v6 = vpack.c.bf16 %v1112_v4, %v1111_v3  ;;  %v2630_v7 = vpop.f32.mrb[4].mxu1  ;;  %2736 = vmatprep.subr.bf16.mxu1 %v3012_v1  ;;  %v3014_v3 = vld [vmem:[#allocation14 + $0x10] sm:$0xff]   ;;  %v3015_v4 = vld [vmem:[#allocation14 + $0x18] sm:$0xff]  }
 0x2e2   : > { %v1101_v8 = vadd.f32 %v2630_v7, %v2373_v56  ;;  %v1041_v9 = vpop.f32.mrb[5].mxu1  ;;  %2737 = vmatpush3.bf16.msra.mxu1 %v3012_v1  ;;  %v3016_v7 = vld [vmem:[#allocation14 + $0x20] sm:$0xff]  }
 0x2e3   : > { %v1099_v10 = vadd.f32 %v2373_v56, %v1041_v9  ;;  %v2631_v11 = vpop.f32.mrb[6].mxu1  ;;  %2640 = vmatprep.subr.bf16.mxu0 %v3911_v6  ;;  %2738 = vmatprep.subr.bf16.mxu1 %v3013_v2 }
 0x2e4   : > { %v1102_v12 = vadd.f32 %v2631_v11, %v2373_v56  ;;  %v1044_v14 = vpop.f32.mrb[7].mxu1  ;;  %2641 = vmatpush3.bf16.msra.mxu0 %v3911_v6  ;;  %v1117_v17 = vmax.f32 %v1101_v8, 0.0  ;;  %v3017_v8 = vld [vmem:[#allocation14 + $0x28] sm:$0xff]  }
 0x2e5   : > { %v1100_v16 = vadd.f32 %v2373_v56, %v1044_v14  ;;  %2642 = vmatprep.subr.bf16.mxu0 %v3909_v5  ;;  %v1115_v21 = vmax.f32 %v1099_v10, 0.0 }
 0x2e6   : > { %v1118_v20 = vmax.f32 %v1102_v12, 0.0  ;;  %2739 = vmatpush3.bf16.msra.mxu1 %v3013_v2 }
 0x2e7   : > { %v1116_v24 = vmax.f32 %v1100_v16, 0.0  ;;  %2740 = vmatprep.subr.bf16.mxu1 %v3014_v3 }
 0x2e8   : > { %v3916_v25 = vpack.c.bf16 %v1118_v20, %v1117_v17  ;;  %2643 = vmatpush3.bf16.msra.mxu0 %v3909_v5 }
 0x2e9   : > { %v3919_v27 = vpack.c.bf16 %v1116_v24, %v1115_v21  ;;  %v2634_v28 = vpop.f32.mrb[8].mxu1 }
 0x2ea   : > { %v1105_v29 = vadd.f32 %v2634_v28, %v2373_v56  ;;  %v1057_v30 = vpop.f32.mrb[9].mxu1  ;;  %2741 = vmatpush3.bf16.msra.mxu1 %v3014_v3 }
 0x2eb   : > { %v1103_v31 = vadd.f32 %v2373_v56, %v1057_v30  ;;  %v2635_v32 = vpop.f32.mrb[10].mxu1  ;;  %2644 = vmatprep.subr.bf16.mxu0 %v3919_v27  ;;  %2742 = vmatprep.subr.bf16.mxu1 %v3015_v4 }
 0x2ec   : > { %v1106_v33 = vadd.f32 %v2635_v32, %v2373_v56  ;;  %v1060_v34 = vpop.f32.mrb[11].mxu1  ;;  %2645 = vmatpush3.bf16.msra.mxu0 %v3919_v27  ;;  %v1121_v36 = vmax.f32 %v1105_v29, 0.0 }
 0x2ed   : > { %v1104_v35 = vadd.f32 %v2373_v56, %v1060_v34  ;;  %2646 = vmatprep.subr.bf16.mxu0 %v3916_v25  ;;  %v1119_v38 = vmax.f32 %v1103_v31, 0.0 }
 0x2ee   : > { %v1122_v37 = vmax.f32 %v1106_v33, 0.0  ;;  %2743 = vmatpush3.bf16.msra.mxu1 %v3015_v4  ;;  %v3022_v4 = vld [vmem:[#allocation13 + $0x10] sm:$0xff]  }
 0x2ef   : > { %v1120_v39 = vmax.f32 %v1104_v35, 0.0  ;;  %2744 = vmatprep.subr.bf16.mxu1 %v3016_v7 }
 0x2f0   : > { %v3924_v40 = vpack.c.bf16 %v1122_v37, %v1121_v36  ;;  %2647 = vmatpush3.bf16.msra.mxu0 %v3916_v25 }
 0x2f1   : > { %v3927_v41 = vpack.c.bf16 %v1120_v39, %v1119_v38  ;;  %v2638_v42 = vpop.f32.mrb[12].mxu1 }
 0x2f2   : > { %v1109_v43 = vadd.f32 %v2638_v42, %v2373_v56  ;;  %v1073_v44 = vpop.f32.mrb[13].mxu1  ;;  %2745 = vmatpush3.bf16.msra.mxu1 %v3016_v7 }
 0x2f3   : > { %v1107_v45 = vadd.f32 %v2373_v56, %v1073_v44  ;;  %v2639_v46 = vpop.f32.mrb[14].mxu1  ;;  %2648 = vmatprep.subr.bf16.mxu0 %v3927_v41  ;;  %2746 = vmatprep.subr.bf16.mxu1 %v3017_v8  ;;  %v3018_v44 = vld [vmem:[#allocation14 + $0x30] sm:$0xff]  }
 0x2f4   : > { %v1110_v47 = vadd.f32 %v2639_v46, %v2373_v56  ;;  %v1076_v48 = vpop.f32.mrb[15].mxu1  ;;  %2649 = vmatpush3.bf16.msra.mxu0 %v3927_v41  ;;  %v1125_v50 = vmax.f32 %v1109_v43, 0.0  ;;  %v3020_v46 = vld [vmem:[#allocation13] sm:$0xff]  }
 0x2f5   : > { %v1108_v49 = vadd.f32 %v2373_v56, %v1076_v48  ;;  %2650 = vmatprep.subr.bf16.mxu0 %v3924_v40  ;;  %v1123_v52 = vmax.f32 %v1107_v45, 0.0  ;;  %v2997_v56 = vld [vmem:[#allocation11 + $0x8] sm:$0xff]   ;;  %v3019_v45 = vld [vmem:[#allocation14 + $0x38] sm:$0xff]  }
 0x2f6   : > { %v1126_v51 = vmax.f32 %v1110_v47, 0.0  ;;  %2747 = vmatpush3.bf16.msra.mxu1 %v3017_v8  ;;  %v3959_v47 = vld [vmem:[%s4234_s12] ss:$0 sm:$0xff] }
 0x2f7   : > { %v1124_v53 = vmax.f32 %v1108_v49, 0.0  ;;  %2748 = vmatprep.subr.bf16.mxu1 %v3018_v44 }
 0x2f8   : > { %v3932_v54 = vpack.c.bf16 %v1126_v51, %v1125_v50  ;;  %2651 = vmatpush3.bf16.msra.mxu0 %v3924_v40 }
 0x2f9   : > { %v3935_v55 = vpack.c.bf16 %v1124_v53, %v1123_v52 }
 0x2fa   : > { %2749 = vmatpush3.bf16.msra.mxu1 %v3018_v44 }
 0x2fb   : > { %2652 = vmatprep.subr.bf16.mxu0 %v3935_v55  ;;  %2750 = vmatprep.subr.bf16.mxu1 %v3019_v45 }
 0x2fc   : > { %2653 = vmatpush3.bf16.msra.mxu0 %v3935_v55 }
 0x2fd   : > { %2654 = vmatprep.subr.bf16.mxu0 %v3932_v54 }
 0x2fe   : > { %2751 = vmatpush3.bf16.msra.mxu1 %v3019_v45 }
 0x2ff   : > { %2768 = vmatprep.subr.bf16.mxu1 %v3020_v46 }
 0x300   : > { %2655 = vmatpush3.bf16.msra.mxu0 %v3932_v54 }
 0x301   : > { %2672 = vmatprep.subr.bf16.mxu0 %v2996_v57 }
 0x303   : > { %2657 = vmatmul.mubr.bf16.vlgmr.msra.gmra.mrb[16].mxu0 %v3870_v13  ;;  %v3002_v13 = vld [vmem:[#allocation11 + $0x30] sm:$0xff]  }
 0x304   : > { %2673 = vmatpush3.bf16.msra.mxu0 %v2996_v57  ;;  %2660 = vmatprep.mubr.bf16.mxu0 %v3873_v15  ;;  %v3003_v15 = vld [vmem:[#allocation11 + $0x38] sm:$0xff]  }
 0x305   : > { %2674 = vmatprep.subr.bf16.mxu0 %v2997_v56 }
 0x308   : > { %2675 = vmatpush3.bf16.msra.mxu0 %v2997_v56 }
 0x309   : > { %2676 = vmatprep.subr.bf16.mxu0 %v2998_v58 }
 0x30b   : > { %2661 = vmatmul.mubr.bf16.gmra.mrb[20].mxu0 %v3879_v18  ;;  %v3004_v18 = vld [vmem:[#allocation10] sm:$0xff]  }
 0x30c   : > { %2677 = vmatpush3.bf16.msra.mxu0 %v2998_v58  ;;  %2664 = vmatprep.mubr.bf16.mxu0 %v3882_v19  ;;  %v3005_v19 = vld [vmem:[#allocation10 + $0x8] sm:$0xff]  }
 0x30d   : > { %2678 = vmatprep.subr.bf16.mxu0 %v2999_v59 }
 0x310   : > { %2679 = vmatpush3.bf16.msra.mxu0 %v2999_v59 }
 0x311   : > { %2680 = vmatprep.subr.bf16.mxu0 %v3000_v60 }
 0x313   : > { %2665 = vmatmul.mubr.bf16.gmra.mrb[24].mxu0 %v3887_v22  ;;  %v3006_v22 = vld [vmem:[#allocation10 + $0x10] sm:$0xff]  }
 0x314   : > { %2681 = vmatpush3.bf16.msra.mxu0 %v3000_v60  ;;  %2668 = vmatprep.mubr.bf16.mxu0 %v3890_v23  ;;  %v3007_v23 = vld [vmem:[#allocation10 + $0x18] sm:$0xff]  }
 0x315   : > { %2682 = vmatprep.subr.bf16.mxu0 %v3001_v61 }
 0x318   : > { %2683 = vmatpush3.bf16.msra.mxu0 %v3001_v61 }
 0x319   : > { %2684 = vmatprep.subr.bf16.mxu0 %v3002_v13 }
 0x31b   : > { %2669 = vmatmul.mubr.bf16.gmra.mrb[28].mxu0 %v3897_v26  ;;  %v3008_v26 = vld [vmem:[#allocation10 + $0x20] sm:$0xff]  }
 0x31c   : > { %2685 = vmatpush3.bf16.msra.mxu0 %v3002_v13  ;;  %2688 = vmatprep.mubr.bf16.mxu0 %v3911_v6 }
 0x31d   : > { %2686 = vmatprep.subr.bf16.mxu0 %v3003_v15 }
 0x320   : > { %2687 = vmatpush3.bf16.msra.mxu0 %v3003_v15 }
 0x321   : > { %2704 = vmatprep.subr.bf16.mxu0 %v3004_v18 }
 0x323   : > { %2689 = vmatmul.mubr.bf16.vlgmr.msra.gmra.mrb[32].mxu0 %v3909_v5 }
 0x324   : > { %2692 = vmatprep.mubr.bf16.mxu0 %v3919_v27  ;;  %2705 = vmatpush3.bf16.msra.mxu0 %v3004_v18 }
 0x325   : > { %2706 = vmatprep.subr.bf16.mxu0 %v3005_v19 }
 0x328   : > { %2707 = vmatpush3.bf16.msra.mxu0 %v3005_v19 }
 0x329   : > { %2708 = vmatprep.subr.bf16.mxu0 %v3006_v22 }
 0x32b   : > { %2693 = vmatmul.mubr.bf16.gmra.mrb[36].mxu0 %v3916_v25 }
 0x32c   : > { %2696 = vmatprep.mubr.bf16.mxu0 %v3927_v41  ;;  %2709 = vmatpush3.bf16.msra.mxu0 %v3006_v22 }
 0x32d   : > { %2710 = vmatprep.subr.bf16.mxu0 %v3007_v23 }
 0x330   : > { %2711 = vmatpush3.bf16.msra.mxu0 %v3007_v23  ;;  %v3021_v23 = vld [vmem:[#allocation13 + $0x8] sm:$0xff]  }
 0x331   : > { %2712 = vmatprep.subr.bf16.mxu0 %v3008_v26 }
 0x333   : > { %2697 = vmatmul.mubr.bf16.gmra.mrb[40].mxu0 %v3924_v40 }
 0x334   : > { %2700 = vmatprep.mubr.bf16.mxu0 %v3935_v55  ;;  %2713 = vmatpush3.bf16.msra.mxu0 %v3008_v26 }
 0x335   : > { %2714 = vmatprep.subr.bf16.mxu0 %v3009_v62 }
 0x338   : > { %2715 = vmatpush3.bf16.msra.mxu0 %v3009_v62 }
 0x339   : > { %2716 = vmatprep.subr.bf16.mxu0 %v3010_v63 }
 0x33b   : > { %2701 = vmatmul.mubr.bf16.gmra.mrb[44].mxu0 %v3932_v54 }
 0x33c   : > { %2717 = vmatpush3.bf16.msra.mxu0 %v3010_v63 }
 0x33d   : > { %2718 = vmatprep.subr.bf16.mxu0 %v3011_v0 }
 0x340   : > { %2719 = vmatpush3.bf16.msra.mxu0 %v3011_v0 }
 0x3d6   : > { %v2658_v9 = vpop.f32.mrb[16].mxu0 }
 0x3d7   : > { %v1169_v10 = vpop.f32.mrb[17].mxu0 }
 0x3d8   : > { %v2659_v11 = vpop.f32.mrb[18].mxu0 }
 0x3d9   : > { %v1233_v12 = vpack.c.bf16 %v2659_v11, %v2658_v9  ;;  %v1172_v14 = vpop.f32.mrb[19].mxu0 }
 0x3da   : > { %v1232_v16 = vpack.c.bf16 %v1172_v14, %v1169_v10 }
 0x3dc   : > { %2720 = vmatprep.mubr.bf16.mxu0 %v1232_v16  ;;  %v3023_v16 = vld [vmem:[#allocation13 + $0x18] sm:$0xff]  }
 0x3dd   : > { %2721 = vmatmul.mubr.bf16.vlgmr.msra.gmra.mrb[32].mxu0 %v1233_v12 }
 0x3de   : > { %v2662_v17 = vpop.f32.mrb[20].mxu0 }
 0x3df   : > { %v1185_v20 = vpop.f32.mrb[21].mxu0 }
 0x3e0   : > { %v2663_v21 = vpop.f32.mrb[22].mxu0 }
 0x3e1   : > { %v1235_v24 = vpack.c.bf16 %v2663_v21, %v2662_v17  ;;  %v1188_v28 = vpop.f32.mrb[23].mxu0 }
 0x3e2   : > { %v1234_v29 = vpack.c.bf16 %v1188_v28, %v1185_v20 }
 0x3e4   : > { %2724 = vmatprep.mubr.bf16.mxu0 %v1234_v29 }
 0x3e5   : > { %2725 = vmatmul.mubr.bf16.gmra.mrb[36].mxu0 %v1235_v24 }
 0x3e6   : > { %v2666_v30 = vpop.f32.mrb[24].mxu0 }
 0x3e7   : > { %v1201_v31 = vpop.f32.mrb[25].mxu0 }
 0x3e8   : > { %v2667_v32 = vpop.f32.mrb[26].mxu0 }
 0x3e9   : > { %v1237_v33 = vpack.c.bf16 %v2667_v32, %v2666_v30  ;;  %v1204_v34 = vpop.f32.mrb[27].mxu0 }
 0x3ea   : > { %v1236_v35 = vpack.c.bf16 %v1204_v34, %v1201_v31  ;;  %v3024_v31 = vld [vmem:[#allocation13 + $0x20] sm:$0xff]  }
 0x3ec   : > { %2728 = vmatprep.mubr.bf16.mxu0 %v1236_v35 }
 0x3ed   : > { %2729 = vmatmul.mubr.bf16.gmra.mrb[40].mxu0 %v1237_v33 }
 0x3ee   : > { %v2670_v36 = vpop.f32.mrb[28].mxu0 }
 0x3ef   : > { %v1217_v37 = vpop.f32.mrb[29].mxu0 }
 0x3f0   : > { %v2671_v38 = vpop.f32.mrb[30].mxu0 }
 0x3f1   : > { %v1239_v39 = vpack.c.bf16 %v2671_v38, %v2670_v36  ;;  %v1220_v42 = vpop.f32.mrb[31].mxu0 }
 0x3f2   : > { %v1238_v43 = vpack.c.bf16 %v1220_v42, %v1217_v37 }
 0x3f4   : > { %2732 = vmatprep.mubr.bf16.mxu0 %v1238_v43 }
 0x3f5   : > { %2733 = vmatmul.mubr.bf16.gmra.mrb[44].mxu0 %v1239_v39  ;;  %v3025_v39 = vld [vmem:[#allocation13 + $0x28] sm:$0xff]  }
 0x4b0   : > { %v2722_v48 = vpop.f32.mrb[32].mxu0 }
 0x4b1   : > { %v1571_v49 = vadd.f32 %v2722_v48, %v3959_v47  ;;  %v1499_v50 = vpop.f32.mrb[33].mxu0 }
 0x4b2   : > { %v1569_v51 = vadd.f32 %v3959_v47, %v1499_v50  ;;  %v2723_v52 = vpop.f32.mrb[34].mxu0  ;;  %v3026_v50 = vld [vmem:[#allocation13 + $0x30] sm:$0xff]  }
 0x4b3   : > { %v1572_v53 = vadd.f32 %v2723_v52, %v3959_v47  ;;  %v1502_v57 = vpop.f32.mrb[35].mxu0  ;;  %v1587_v58 = vmax.f32 %v1571_v49, 0.0 }
 0x4b4   : > { %v1570_v56 = vadd.f32 %v3959_v47, %v1502_v57  ;;  %v1585_v60 = vmax.f32 %v1569_v51, 0.0 }
 0x4b5   : > { %v1588_v59 = vmax.f32 %v1572_v53, 0.0 }
 0x4b6   : > { %v1586_v61 = vmax.f32 %v1570_v56, 0.0  ;;  %v3027_v56 = vld [vmem:[#allocation13 + $0x38] sm:$0xff]  }
 0x4b7   : > { %v1602_v13 = vpack.c.bf16 %v1588_v59, %v1587_v58 }
 0x4b8   : > { %v1601_v15 = vpack.c.bf16 %v1586_v61, %v1585_v60  ;;  %v2726_v18 = vpop.f32.mrb[36].mxu0 }
 0x4b9   : > { %v1575_v19 = vadd.f32 %v2726_v18, %v3959_v47  ;;  %v1515_v22 = vpop.f32.mrb[37].mxu0 }
 0x4ba   : > { %v1573_v26 = vadd.f32 %v3959_v47, %v1515_v22  ;;  %v2727_v62 = vpop.f32.mrb[38].mxu0  ;;  %2752 = vmatprep.mubr.bf16.mxu1 %v1601_v15 }
 0x4bb   : > { %v1576_v63 = vadd.f32 %v2727_v62, %v3959_v47  ;;  %v1518_v0 = vpop.f32.mrb[39].mxu0  ;;  %2753 = vmatmul.mubr.bf16.vlgmr.msra.gmra.mrb[16].mxu1 %v1602_v13  ;;  %v1591_v2 = vmax.f32 %v1575_v19, 0.0 }
 0x4bc   : > { %v1574_v1 = vadd.f32 %v3959_v47, %v1518_v0  ;;  %2769 = vmatpush3.bf16.msra.mxu1 %v3020_v46  ;;  %v1589_v7 = vmax.f32 %v1573_v26, 0.0 }
 0x4bd   : > { %v1592_v3 = vmax.f32 %v1576_v63, 0.0  ;;  %2770 = vmatprep.subr.bf16.mxu1 %v3021_v23 }
 0x4be   : > { %v1590_v8 = vmax.f32 %v1574_v1, 0.0 }
 0x4bf   : > { %v1604_v9 = vpack.c.bf16 %v1592_v3, %v1591_v2 }
 0x4c0   : > { %v1603_v10 = vpack.c.bf16 %v1590_v8, %v1589_v7  ;;  %v2730_v11 = vpop.f32.mrb[40].mxu0  ;;  %2771 = vmatpush3.bf16.msra.mxu1 %v3021_v23 }
 0x4c1   : > { %v1579_v12 = vadd.f32 %v2730_v11, %v3959_v47  ;;  %v1531_v14 = vpop.f32.mrb[41].mxu0  ;;  %2772 = vmatprep.subr.bf16.mxu1 %v3022_v4 }
 0x4c2   : > { %v1577_v17 = vadd.f32 %v3959_v47, %v1531_v14  ;;  %v2731_v20 = vpop.f32.mrb[42].mxu0  ;;  %2756 = vmatprep.mubr.bf16.mxu1 %v1603_v10 }
 0x4c3   : > { %v1580_v21 = vadd.f32 %v2731_v20, %v3959_v47  ;;  %v1534_v24 = vpop.f32.mrb[43].mxu0  ;;  %2757 = vmatmul.mubr.bf16.gmra.mrb[20].mxu1 %v1604_v9  ;;  %v1595_v29 = vmax.f32 %v1579_v12, 0.0 }
 0x4c4   : > { %v1578_v28 = vadd.f32 %v3959_v47, %v1534_v24  ;;  %2773 = vmatpush3.bf16.msra.mxu1 %v3022_v4  ;;  %v1593_v32 = vmax.f32 %v1577_v17, 0.0 }
 0x4c5   : > { %v1596_v30 = vmax.f32 %v1580_v21, 0.0  ;;  %2774 = vmatprep.subr.bf16.mxu1 %v3023_v16 }
 0x4c6   : > { %v1594_v33 = vmax.f32 %v1578_v28, 0.0 }
 0x4c7   : > { %v1606_v34 = vpack.c.bf16 %v1596_v30, %v1595_v29 }
 0x4c8   : > { %v1605_v35 = vpack.c.bf16 %v1594_v33, %v1593_v32  ;;  %v2734_v36 = vpop.f32.mrb[44].mxu0  ;;  %2775 = vmatpush3.bf16.msra.mxu1 %v3023_v16 }
 0x4c9   : > { %v1583_v37 = vadd.f32 %v2734_v36, %v3959_v47  ;;  %v1547_v38 = vpop.f32.mrb[45].mxu0  ;;  %2776 = vmatprep.subr.bf16.mxu1 %v3024_v31 }
 0x4ca   : > { %v1581_v42 = vadd.f32 %v3959_v47, %v1547_v38  ;;  %v2735_v43 = vpop.f32.mrb[46].mxu0  ;;  %2760 = vmatprep.mubr.bf16.mxu1 %v1605_v35 }
 0x4cb   : > { %v1584_v44 = vadd.f32 %v2735_v43, %v3959_v47  ;;  %v1550_v45 = vpop.f32.mrb[47].mxu0  ;;  %2761 = vmatmul.mubr.bf16.gmra.mrb[24].mxu1 %v1606_v34  ;;  %v1599_v48 = vmax.f32 %v1583_v37, 0.0 }
 0x4cc   : > { %v1582_v46 = vadd.f32 %v3959_v47, %v1550_v45  ;;  %2777 = vmatpush3.bf16.msra.mxu1 %v3024_v31  ;;  %v1597_v51 = vmax.f32 %v1581_v42, 0.0  ;;  %v1954_v47 = vlaneseq }
 0x4cd   : > { %v1600_v49 = vmax.f32 %v1584_v44, 0.0  ;;  %2778 = vmatprep.subr.bf16.mxu1 %v3025_v39 }
 0x4ce   : > { %v1598_v52 = vmax.f32 %v1582_v46, 0.0  ;;  %v3985_v58 = vand.u32 127, %v1954_v47 }
 0x4cf   : > { %v1608_v53 = vpack.c.bf16 %v1600_v49, %v1599_v48 }
 0x4d0   : > { %v1607_v57 = vpack.c.bf16 %v1598_v52, %v1597_v51  ;;  %2779 = vmatpush3.bf16.msra.mxu1 %v3025_v39  ;;  %vm1956_vm0 = vcmp.lt.s32.totalorder %v3985_v58, 4 }
 0x4d1   : > { %2780 = vmatprep.subr.bf16.mxu1 %v3026_v50 }
 0x4d2   : > { %2764 = vmatprep.mubr.bf16.mxu1 %v1607_v57 }
 0x4d3   : > { %2765 = vmatmul.mubr.bf16.gmra.mrb[28].mxu1 %v1608_v53 }
 0x4d4   : > { %2781 = vmatpush3.bf16.msra.mxu1 %v3026_v50  ;;  %2784 = vmatprep.mubr.bf16.mxu1 %v3911_v6  ;;  %v2407_v6 = vld [vmem:[%s4235_s5] ss:$0 sm:$0xff] }
 0x4d5   : > { %2782 = vmatprep.subr.bf16.mxu1 %v3027_v56 }
 0x4d8   : > { %2783 = vmatpush3.bf16.msra.mxu1 %v3027_v56 }
 0x4db   : > { %2785 = vmatmul.mubr.bf16.vlgmr.msra.gmra.mrb[16].mxu1 %v3909_v5 }
 0x4dc   : > { %2788 = vmatprep.mubr.bf16.mxu1 %v3919_v27 }
 0x4e3   : > { %2789 = vmatmul.mubr.bf16.gmra.mrb[20].mxu1 %v3916_v25 }
 0x4e4   : > { %2792 = vmatprep.mubr.bf16.mxu1 %v3927_v41 }
 0x4eb   : > { %2793 = vmatmul.mubr.bf16.gmra.mrb[24].mxu1 %v3924_v40 }
 0x4ec   : > { %2796 = vmatprep.mubr.bf16.mxu1 %v3935_v55 }
 0x4f3   : > { %2797 = vmatmul.mubr.bf16.gmra.mrb[28].mxu1 %v3932_v54 }
 0x5ae   : > { %v2786_v5 = vpop.f32.mrb[16].mxu1 }
 0x5af   : > { %v1940_v27 = vadd.f32 %v2786_v5, %v2407_v6  ;;  %v1868_v25 = vpop.f32.mrb[17].mxu1 }
 0x5b0   : > { %v1938_v59 = vadd.f32 %v2407_v6, %v1868_v25  ;;  %v2787_v41 = vpop.f32.mrb[18].mxu1 }
 0x5b1   : > { %v1941_v60 = vadd.f32 %v2787_v41, %v2407_v6  ;;  %v1871_v40 = vpop.f32.mrb[19].mxu1  ;;  %v1959_v55 = vsel %vm1956_vm0, %v1940_v27, -1e+30 }
 0x5b2   : > { %v1939_v54 = vadd.f32 %v2407_v6, %v1871_v40  ;;  %1977 = vmax.xlane.f32.xlu1 %v1959_v55  ;;  %v1957_v61 = vsel %vm1956_vm0, %v1938_v59, -1e+30 }
 0x5b3   : > { %1973 = vmax.xlane.f32.xlu0 %v1957_v61  ;;  %v1960_v13 = vsel %vm1956_vm0, %v1941_v60, -1e+30 }
 0x5b4   : > { %v1958_v18 = vsel %vm1956_vm0, %v1939_v54, -1e+30 }
 0x5b6   : > { %1979 = vmax.xlane.f32.xlu1 %v1960_v13  ;;  %v2790_v15 = vpop.f32.mrb[20].mxu1 }
 0x5b7   : > { %v1944_v19 = vadd.f32 %v2790_v15, %v2407_v6  ;;  %1975 = vmax.xlane.f32.xlu0 %v1958_v18  ;;  %v1884_v22 = vpop.f32.mrb[21].mxu1 }
 0x5b8   : > { %v2791_v23 = vpop.f32.mrb[22].mxu1  ;;  %v1942_v0 = vadd.f32 %v2407_v6, %v1884_v22 }
 0x5b9   : > { %v1945_v26 = vadd.f32 %v2791_v23, %v2407_v6  ;;  %v1887_v62 = vpop.f32.mrb[23].mxu1  ;;  %v1963_v63 = vsel %vm1956_vm0, %v1944_v19, -1e+30 }
 0x5ba   : > { %v1943_v1 = vadd.f32 %v2407_v6, %v1887_v62  ;;  %v1961_v4 = vsel %vm1956_vm0, %v1942_v0, -1e+30 }
 0x5bb   : > { %1985 = vmax.xlane.f32.xlu0 %v1963_v63  ;;  %v1964_v2 = vsel %vm1956_vm0, %v1945_v26, -1e+30 }
 0x5bc   : > { %1987 = vmax.xlane.f32.xlu1 %v1964_v2  ;;  %v1962_v9 = vsel %vm1956_vm0, %v1943_v1, -1e+30 }
 0x5be   : > { %v2794_v3 = vpop.f32.mrb[24].mxu1 }
 0x5bf   : > { %v1948_v7 = vadd.f32 %v2794_v3, %v2407_v6  ;;  %1981 = vmax.xlane.f32.xlu0 %v1961_v4  ;;  %v1900_v8 = vpop.f32.mrb[25].mxu1 }
 0x5c0   : > { %1983 = vmax.xlane.f32.xlu1 %v1962_v9  ;;  %v2795_v10 = vpop.f32.mrb[26].mxu1  ;;  %v1946_v16 = vadd.f32 %v2407_v6, %v1900_v8 }
 0x5c1   : > { %v1949_v11 = vadd.f32 %v2795_v10, %v2407_v6  ;;  %v1903_v12 = vpop.f32.mrb[27].mxu1  ;;  %v1967_v14 = vsel %vm1956_vm0, %v1948_v7, -1e+30 }
 0x5c2   : > { %v1947_v17 = vadd.f32 %v2407_v6, %v1903_v12  ;;  %v4013_v24 = vsel %vm1956_vm0, %v1946_v16, -1e+30 }
 0x5c3   : > { %1993 = vmax.xlane.f32.xlu0 %v1967_v14  ;;  %v1968_v20 = vsel %vm1956_vm0, %v1949_v11, -1e+30 }
 0x5c4   : > { %1995 = vmax.xlane.f32.xlu1 %v1968_v20  ;;  %v4018_v29 = vsel %vm1956_vm0, %v1947_v17, -1e+30 }
 0x5c6   : > { %v2798_v21 = vpop.f32.mrb[28].mxu1 }
 0x5c7   : > { %1989 = vmax.xlane.f32.xlu0 %v4013_v24  ;;  %v1916_v28 = vpop.f32.mrb[29].mxu1  ;;  %v1952_v33 = vadd.f32 %v2798_v21, %v2407_v6 }
 0x5c8   : > { %v1950_v30 = vadd.f32 %v2407_v6, %v1916_v28  ;;  %1991 = vmax.xlane.f32.xlu1 %v4018_v29  ;;  %v2799_v31 = vpop.f32.mrb[30].mxu1 }
 0x5c9   : > { %v1919_v32 = vpop.f32.mrb[31].mxu1  ;;  %v1953_v36 = vadd.f32 %v2799_v31, %v2407_v6  ;;  %v4033_v38 = vsel %vm1956_vm0, %v1952_v33, -1e+30 }
 0x5ca   : > { %v1951_v34 = vadd.f32 %v2407_v6, %v1919_v32  ;;  %v4023_v35 = vsel %vm1956_vm0, %v1950_v30, -1e+30 }
 0x5cb   : > { %1997 = vmax.xlane.f32.xlu0 %v4023_v35  ;;  %v4038_v39 = vsel %vm1956_vm0, %v1953_v36, -1e+30 }
 0x5cc   : > { %v4028_v37 = vsel %vm1956_vm0, %v1951_v34, -1e+30 }
 0x5cd   : > { %1999 = vmax.xlane.f32.xlu1 %v4028_v37 }
 0x5cf   : > { %2001 = vmax.xlane.f32.xlu0 %v4033_v38 }
 0x5d1   : > { %2003 = vmax.xlane.f32.xlu1 %v4038_v39 }
 0x63f   : > { %v1978_v42 = vpop.xlane.xlu1 %1977 }
 0x640   : > { %v4041_v43 = vsub.f32 %v1959_v55, %v1978_v42  ;;  %v1974_v44 = vpop.xlane.xlu0 %1973 }
 0x641   : > { %v4043_v45 = vsub.f32 %v1957_v61, %v1974_v44 }
 0x642   : > { %v2025_v46 = vmul.f32 1.442695, %v4041_v43 }
 0x643   : > { %v2021_v48 = vmul.f32 1.442695, %v4043_v45  ;;  %v1980_v49 = vpop.xlane.xlu1 %1979 }
 0x644   : > { %3028 = vpow2.f32 %v2025_v46  ;;  %v4047_v50 = vsub.f32 %v1960_v13, %v1980_v49  ;;  %v1976_v51 = vpop.xlane.xlu0 %1975 }
 0x645   : > { %v4049_v52 = vsub.f32 %v1958_v18, %v1976_v51  ;;  %3030 = vpow2.f32 %v2021_v48 }
 0x646   : > { %v2027_v53 = vmul.f32 1.442695, %v4047_v50 }
 0x647   : > { %v2023_v57 = vmul.f32 1.442695, %v4049_v52 }
 0x648   : > { %3032 = vpow2.f32 %v2027_v53  ;;  %v1986_v56 = vpop.xlane.xlu0 %1985 }
 0x649   : > { %v4053_v47 = vsub.f32 %v1963_v63, %v1986_v56  ;;  %v1988_v58 = vpop.xlane.xlu1 %1987  ;;  %3034 = vpow2.f32 %v2023_v57 }
 0x64a   : > { %v4055_v6 = vsub.f32 %v1964_v2, %v1988_v58 }
 0x64b   : > { %v2033_v5 = vmul.f32 1.442695, %v4053_v47 }
 0x64c   : > { %v2035_v27 = vmul.f32 1.442695, %v4055_v6  ;;  %v1982_v25 = vpop.xlane.xlu0 %1981 }
 0x64d   : > { %3036 = vpow2.f32 %v2033_v5  ;;  %v4059_v59 = vsub.f32 %v1961_v4, %v1982_v25  ;;  %v1984_v41 = vpop.xlane.xlu1 %1983 }
 0x64e   : > { %v3029_v60 = vpop.eup %3028  ;;  %v4061_v40 = vsub.f32 %v1962_v9, %v1984_v41  ;;  %3038 = vpow2.f32 %v2035_v27 }
 0x64f   : > { %v2029_v55 = vmul.f32 1.442695, %v4059_v59  ;;  %2057 = vadd.xlane.f32.xlu0 %v3029_v60  ;;  %v3031_v13 = vpop.eup %3030 }
 0x650   : > { %v2031_v54 = vmul.f32 1.442695, %v4061_v40  ;;  %v1994_v61 = vpop.xlane.xlu0 %1993 }
 0x651   : > { %3040 = vpow2.f32 %v2029_v55  ;;  %v4065_v15 = vsub.f32 %v1967_v14, %v1994_v61  ;;  %v1996_v18 = vpop.xlane.xlu1 %1995 }
 0x652   : > { %v3033_v19 = vpop.eup %3032  ;;  %v4067_v22 = vsub.f32 %v1968_v20, %v1996_v18  ;;  %3042 = vpow2.f32 %v2031_v54 }
 0x653   : > { %v2041_v23 = vmul.f32 1.442695, %v4065_v15  ;;  %2053 = vadd.xlane.f32.xlu0 %v3031_v13  ;;  %2059 = vadd.xlane.f32.xlu1 %v3033_v19  ;;  %v3035_v1 = vpop.eup %3034 }
 0x654   : > { %v2043_v26 = vmul.f32 1.442695, %v4067_v22  ;;  %v1990_v62 = vpop.xlane.xlu0 %1989 }
 0x655   : > { %3044 = vpow2.f32 %v2041_v23  ;;  %v4072_v63 = vsub.f32 %v4013_v24, %v1990_v62  ;;  %v1992_v0 = vpop.xlane.xlu1 %1991 }
 0x656   : > { %v4075_v2 = vsub.f32 %v4018_v29, %v1992_v0  ;;  %3046 = vpow2.f32 %v2043_v26 }
 0x657   : > { %v3037_v3 = vpop.eup %3036  ;;  %v2037_v4 = vmul.f32 1.442695, %v4072_v63  ;;  %2055 = vadd.xlane.f32.xlu1 %v3035_v1 }
 0x658   : > { %v2039_v7 = vmul.f32 1.442695, %v4075_v2  ;;  %2065 = vadd.xlane.f32.xlu0 %v3037_v3  ;;  %v1998_v8 = vpop.xlane.xlu0 %1997  ;;  %v3039_v10 = vpop.eup %3038 }
 0x659   : > { %3048 = vpow2.f32 %v2037_v4  ;;  %v4080_v9 = vsub.f32 %v4023_v35, %v1998_v8 }
 0x65a   : > { %v2000_v11 = vpop.xlane.xlu1 %1999  ;;  %3050 = vpow2.f32 %v2039_v7 }
 0x65b   : > { %v3041_v12 = vpop.eup %3040  ;;  %v2045_v14 = vmul.f32 1.442695, %v4080_v9  ;;  %v4084_v16 = vsub.f32 %v4028_v37, %v2000_v11  ;;  %2067 = vadd.xlane.f32.xlu1 %v3039_v10 }
 0x65c   : > { %2061 = vadd.xlane.f32.xlu0 %v3041_v12  ;;  %v2002_v17 = vpop.xlane.xlu0 %2001  ;;  %v3043_v24 = vpop.eup %3042 }
 0x65d   : > { %3052 = vpow2.f32 %v2045_v14  ;;  %v2047_v20 = vmul.f32 1.442695, %v4084_v16  ;;  %v4088_v21 = vsub.f32 %v4033_v38, %v2002_v17 }
 0x65e   : > { %v2004_v28 = vpop.xlane.xlu1 %2003 }
 0x65f   : > { %v3045_v29 = vpop.eup %3044  ;;  %3054 = vpow2.f32 %v2047_v20  ;;  %v2049_v30 = vmul.f32 1.442695, %v4088_v21  ;;  %v4092_v31 = vsub.f32 %v4038_v39, %v2004_v28  ;;  %2063 = vadd.xlane.f32.xlu1 %v3043_v24 }
 0x660   : > { %2073 = vadd.xlane.f32.xlu0 %v3045_v29  ;;  %v3047_v33 = vpop.eup %3046 }
 0x661   : > { %3056 = vpow2.f32 %v2049_v30  ;;  %v2051_v32 = vmul.f32 1.442695, %v4092_v31 }
 0x663   : > { %v3049_v34 = vpop.eup %3048  ;;  %3058 = vpow2.f32 %v2051_v32  ;;  %2075 = vadd.xlane.f32.xlu1 %v3047_v33 }
 0x664   : > { %2069 = vadd.xlane.f32.xlu0 %v3049_v34  ;;  %v3051_v35 = vpop.eup %3050 }
 0x667   : > { %v3053_v36 = vpop.eup %3052  ;;  %2071 = vadd.xlane.f32.xlu1 %v3051_v35 }
 0x668   : > { %2077 = vadd.xlane.f32.xlu0 %v3053_v36 }
 0x669   : > { %v3055_v37 = vpop.eup %3054 }
 0x66b   : > { %v3057_v38 = vpop.eup %3056  ;;  %2079 = vadd.xlane.f32.xlu1 %v3055_v37 }
 0x66c   : > { %2081 = vadd.xlane.f32.xlu0 %v3057_v38 }
 0x66d   : > { %v3059_v39 = vpop.eup %3058 }
 0x66f   : > { %2083 = vadd.xlane.f32.xlu1 %v3059_v39 }
 0x6dc   : > { %v2058_v42 = vpop.xlane.xlu0 %2057 }
 0x6dd   : > { %3060 = vlog2.f32 %v2058_v42 }
 0x6e0   : > { %v2054_v44 = vpop.xlane.xlu0 %2053  ;;  %v2060_v46 = vpop.xlane.xlu1 %2059 }
 0x6e1   : > { %3062 = vlog2.f32 %v2054_v44 }
 0x6e2   : > { %3064 = vlog2.f32 %v2060_v46 }
 0x6e4   : > { %v2056_v48 = vpop.xlane.xlu1 %2055 }
 0x6e5   : > { %3066 = vlog2.f32 %v2056_v48  ;;  %v2066_v49 = vpop.xlane.xlu0 %2065 }
 0x6e6   : > { %3068 = vlog2.f32 %v2066_v49 }
 0x6e7   : > { %v3061_v51 = vpop.eup %3060 }
 0x6e8   : > { %v2090_v53 = vmul.f32 0.6931472, %v3061_v51  ;;  %v2068_v57 = vpop.xlane.xlu1 %2067 }
 0x6e9   : > { %3070 = vlog2.f32 %v2068_v57  ;;  %v2062_v56 = vpop.xlane.xlu0 %2061 }
 0x6ea   : > { %v2119_v58 = vsub.f32 %v4041_v43, %v2090_v53  ;;  %3072 = vlog2.f32 %v2062_v56 }
 0x6eb   : > { %v3063_v5 = vpop.eup %3062 }
 0x6ec   : > { %v3065_v27 = vpop.eup %3064  ;;  %2135 = vst [vmem:[%s4097_s29 + $0x10] sm:$0xff] %v2119_v58  ;;  %v2086_v25 = vmul.f32 0.6931472, %v3063_v5  ;;  %v2064_v41 = vpop.xlane.xlu1 %2063 }
 0x6ed   : > { %v2092_v60 = vmul.f32 0.6931472, %v3065_v27  ;;  %3074 = vlog2.f32 %v2064_v41  ;;  %v2074_v55 = vpop.xlane.xlu0 %2073 }
 0x6ee   : > { %v2117_v54 = vsub.f32 %v4043_v45, %v2086_v25  ;;  %3076 = vlog2.f32 %v2074_v55 }
 0x6ef   : > { %v3067_v61 = vpop.eup %3066  ;;  %v2120_v43 = vsub.f32 %v4047_v50, %v2092_v60 }
 0x6f0   : > { %v3069_v13 = vpop.eup %3068  ;;  %2133 = vst [vmem:[%s4097_s29] sm:$0xff] %v2117_v54  ;;  %v2088_v18 = vmul.f32 0.6931472, %v3067_v61  ;;  %v2076_v19 = vpop.xlane.xlu1 %2075 }
 0x6f1   : > { %2136 = vst [vmem:[%s4097_s29 + $0x18] sm:$0xff] %v2120_v43  ;;  %v2098_v23 = vmul.f32 0.6931472, %v3069_v13  ;;  %3078 = vlog2.f32 %v2076_v19  ;;  %v2070_v26 = vpop.xlane.xlu0 %2069 }
 0x6f2   : > { %v2118_v62 = vsub.f32 %v4049_v52, %v2088_v18  ;;  %3080 = vlog2.f32 %v2070_v26 }
 0x6f3   : > { %v3071_v0 = vpop.eup %3070  ;;  %v2123_v45 = vsub.f32 %v4053_v47, %v2098_v23 }
 0x6f4   : > { %v3073_v1 = vpop.eup %3072  ;;  %2134 = vst [vmem:[%s4097_s29 + $0x8] sm:$0xff] %v2118_v62  ;;  %v2100_v50 = vmul.f32 0.6931472, %v3071_v0  ;;  %v2072_v3 = vpop.xlane.xlu1 %2071 }
 0x6f5   : > { %2139 = vst [vmem:[%s4097_s29 + $0x30] sm:$0xff] %v2123_v45  ;;  %v2094_v4 = vmul.f32 0.6931472, %v3073_v1  ;;  %3082 = vlog2.f32 %v2072_v3  ;;  %v2078_v7 = vpop.xlane.xlu0 %2077 }
 0x6f6   : > { %v2124_v8 = vsub.f32 %v4055_v6, %v2100_v50  ;;  %3084 = vlog2.f32 %v2078_v7 }
 0x6f7   : > { %v3075_v10 = vpop.eup %3074  ;;  %v2121_v52 = vsub.f32 %v4059_v59, %v2094_v4 }
 0x6f8   : > { %v3077_v11 = vpop.eup %3076  ;;  %2140 = vst [vmem:[%s4097_s29 + $0x38] sm:$0xff] %v2124_v8  ;;  %v2096_v47 = vmul.f32 0.6931472, %v3075_v10  ;;  %v2080_v12 = vpop.xlane.xlu1 %2079 }
 0x6f9   : > { %2137 = vst [vmem:[%s4097_s29 + $0x20] sm:$0xff] %v2121_v52  ;;  %v2106_v14 = vmul.f32 0.6931472, %v3077_v11  ;;  %3086 = vlog2.f32 %v2080_v12  ;;  %v2082_v17 = vpop.xlane.xlu0 %2081 }
 0x6fa   : > { %v2122_v20 = vsub.f32 %v4061_v40, %v2096_v47  ;;  %3088 = vlog2.f32 %v2082_v17 }
 0x6fb   : > { %v3079_v6 = vpop.eup %3078  ;;  %v2127_v24 = vsub.f32 %v4065_v15, %v2106_v14 }
 0x6fc   : > { %v3081_v28 = vpop.eup %3080  ;;  %2138 = vst [vmem:[%s4097_s29 + $0x28] sm:$0xff] %v2122_v20  ;;  %v2108_v59 = vmul.f32 0.6931472, %v3079_v6  ;;  %v2084_v29 = vpop.xlane.xlu1 %2083 }
 0x6fd   : > { %2143 = vst [vmem:[%s4097_s29 + $0x50] sm:$0xff] %v2127_v24  ;;  %v2102_v30 = vmul.f32 0.6931472, %v3081_v28  ;;  %3090 = vlog2.f32 %v2084_v29 }
 0x6fe   : > { %v2128_v32 = vsub.f32 %v4067_v22, %v2108_v59 }
 0x6ff   : > { %v3083_v33 = vpop.eup %3082  ;;  %v2125_v40 = vsub.f32 %v4072_v63, %v2102_v30 }
 0x700   : > { %v3085_v34 = vpop.eup %3084  ;;  %2144 = vst [vmem:[%s4097_s29 + $0x58] sm:$0xff] %v2128_v32  ;;  %v2104_v35 = vmul.f32 0.6931472, %v3083_v33 }
 0x701   : > { %2141 = vst [vmem:[%s4097_s29 + $0x40] sm:$0xff] %v2125_v40  ;;  %v2110_v15 = vmul.f32 0.6931472, %v3085_v34 }
 0x702   : > { %v2126_v36 = vsub.f32 %v4075_v2, %v2104_v35 }
 0x703   : > { %v3087_v37 = vpop.eup %3086  ;;  %v2129_v38 = vsub.f32 %v4080_v9, %v2110_v15 }
 0x704   : > { %v3089_v39 = vpop.eup %3088  ;;  %2142 = vst [vmem:[%s4097_s29 + $0x48] sm:$0xff] %v2126_v36  ;;  %v2112_v22 = vmul.f32 0.6931472, %v3087_v37 }
 0x705   : > { %2145 = vst [vmem:[%s4097_s29 + $0x60] sm:$0xff] %v2129_v38  ;;  %v2114_v63 = vmul.f32 0.6931472, %v3089_v39 }
 0x706   : > { %v2130_v42 = vsub.f32 %v4084_v16, %v2112_v22 }
 0x707   : > { %v3091_v44 = vpop.eup %3090  ;;  %v2131_v46 = vsub.f32 %v4088_v21, %v2114_v63 }
 0x708   : > { %2146 = vst [vmem:[%s4097_s29 + $0x68] sm:$0xff] %v2130_v42  ;;  %v2116_v2 = vmul.f32 0.6931472, %v3091_v44 }
 0x709   : > { %2147 = vst [vmem:[%s4097_s29 + $0x70] sm:$0xff] %v2131_v46 }
 0x70a   : > { %v2132_v9 = vsub.f32 %v4092_v31, %v2116_v2 }
 0x70c   : > { %2148 = vst [vmem:[%s4097_s29 + $0x78] sm:$0xff] %v2132_v9 }
 0x70d   : > { %3333 = shalt.err (!%p3330_p3)
}
 0x70e   : > { %s3334_s13 = scalar_lea.hbm %s4133_s24, 2048  ;;  %s3338_s22 = scalar_lea.hbm %s4236_s3, 4096 }
 0x70f   : > { %p3335_p12 = scmp.ne.s32.totalorder %s4133_s24, %s3334_s13  ;;  %p3339_p0 = scmp.lt.u32.totalorder %s4133_s24, %s4236_s3 }
 0x710   : > { %p3340_p6 = scmp.lt.u32.totalorder %s3338_s22, %s3334_s13  ;;  %p3342_p4 = scmp.lt.u32.totalorder %s3334_s13, %s4133_s24 }
 0x711   : > { %p3336_p1 = pnand %p3335_p12, %p4237_p10 }
 0x712   : > { %p3341_p2 = por %p3340_p6, %p3339_p0 }
 0x713   : > { %p3337_p13 = pneg %p3336_p1 }
 0x714   : > { %p3343_p5 = por %p3342_p4, %p3341_p2 }
 0x716   : > { %p3344_p7 = pnand %p3343_p5, %p3337_p13 }
 0x718   : > { %3347 = shalt.err (!%p3344_p7)
}
 0x719   : > { %s3419_s29 = smov 128   ;;  %s3420_s0 = smov 8  }
 0x71a   : > { %2876 = dma.vmem_to_hbm [thread:$0]  (%p4237_p10), %s4135_s26, 2048, %s4133_s24, %s2150_s23, %s3419_s29, %s3419_s29, %s3420_s0  }
 0x71b PF: > { %s2178_s15 = sand.u32 1, %s3394_s17   ;;  %p4238_p9 = scmp.ne.s32.totalorder %s4220_s25, 0 }
 0x71c   : > { %p4239_p8 = scmp.ge.s32.totalorder %s3406_s20, 2  ;;  %s2179_s6 = scalar_lea.sflag [#allocation4], %s2178_s15 }
 0x71e   : > { %p2905_p11 = pnand %p4239_p8, %p4238_p9 }
 0x720   : > { %3389 = dma.done.wait (!%p2905_p11), %s2179_s6, 2048  }
 0x721   : > { %3391 = vsyncadd (!%p2905_p11), %s2179_s6, 4294965248  ;;  %p30_p3 = scmp.ge.s32.totalorder %s3675_s16, 4   ;;  %s4240_s17 = smov %s3398_s18 }
 0x722   : > { %s4241_s18 = smov %s3402_s19  ;;  %s4242_s19 = smov %s3686_s10 }
 0x723   : > { %s4243_s20 = smov %s3675_s16  ;;  %32 = sbr.rel (!%p30_p3) target bundleno = 19 (0x13), region = 146 }
 0x72a   :  { %2184 = vsyncpa [#allocation3], 1 }
 0x72b   :  { %2186 = vsyncpa [#allocation3 + $0x1], 1 }
 0x72c   :  { %2187 = vsyncpa [#allocation6], 1 }
 0x72d   :  { %2189 = vsyncpa [#allocation6 + $0x1], 1 }
 0x72e   :  { %2190 = vsyncpa [#allocation9], 1 }
 0x72f   :  { %2191 = vsyncpa [#allocation12], 1 }
 0x730   :  { %2192 = vsyncpa [#allocation15], 1 }
 0x731   :  { %2193 = vsyncpa [#allocation4], 1 }
 0x732   :  { %2195 = vsyncpa [#allocation4 + $0x1], 1 }

</bundles_post_ra>
